<compile_context>
chip_gen: v6e
topology: v6e:2x2x1
jax: 0.10.0
libtpu: 0.0.40
codegen_flags: <defaults>
</compile_context>

<pallas_src>
import jax
import jax.numpy as jnp
from jax.experimental import pallas as pl
from jax.experimental.pallas import tpu as pltpu

LN_EPS = 1e-5          # torch.nn.LayerNorm default
_MAX_ROWS = 4096       # hard cap on tokens per grid step
_MIN_ROWS = 8


def _cdiv(a, b):
    return -(-a // b)


def _round_up(x, m):
    return _cdiv(x, m) * m


def _vmem_budget():
    """(per-step working-set byte budget, vmem_limit_bytes) from device VMEM."""
    cap = 64 * 1024 * 1024                       # conservative default (v7x per-core)
    try:
        cap = int(pltpu.get_tpu_info().vmem_capacity_bytes)
    except Exception:
        pass
    vmem_limit = min((cap * 3) // 4, 112 * 1024 * 1024)
    budget = (cap * 2) // 5                      # headroom for double buffers / temps
    return budget, vmem_limit


def _pick_steps(n_outer, outer_target):
    """Split n_outer rows into equal tiles; prefer an even step count (v7x 2 TCs)."""
    nsteps = max(1, _cdiv(n_outer, max(outer_target, 1)))
    if nsteps == 1 and n_outer >= 2:
        nsteps = 2                               # give both v7x TensorCores work
    if nsteps > 1 and nsteps % 2:
        nsteps += 1                              # even split across the 2 TCs
    nsteps = min(nsteps, n_outer)
    tile = _cdiv(n_outer, nsteps)
    nsteps = _cdiv(n_outer, tile)
    return tile, nsteps


# ----------------------------- Pallas kernels ------------------------------ #
def _ln_linear_kernel(x_ref, w_ref, b_ref, o_ref):
    """LayerNorm (affine folded into w/b) + x @ W + bias for one row tile."""
    x = x_ref[...].astype(jnp.float32)                          # (tm, K)
    k = x.shape[-1]
    mean = jnp.sum(x, axis=-1, keepdims=True) * (1.0 / k)
    s2 = jnp.sum(x * x, axis=-1, keepdims=True) * (1.0 / k)
    var = jnp.maximum(s2 - mean * mean, 0.0)
    xn = (x - mean) * jax.lax.rsqrt(var + LN_EPS)
    y = jnp.dot(xn.astype(w_ref.dtype), w_ref[...],
                preferred_element_type=jnp.float32)
    y = y + b_ref[...].astype(jnp.float32)
    o_ref[...] = y.astype(o_ref.dtype)


def _merge_ln_linear_kernel(x_ref, w0_ref, w1_ref, b_ref, o_ref):
    """Fused 2x2 patch-merge + LayerNorm(4D) + Linear(4D -> 2D).

    x_ref : (tm, 2, nWh, 2D) -- one contiguous slab; axis 1 = h within the
            2-row group, last axis = (w, D) pairs of the 2-col group.
    o_ref : (tm, nWh, Np)
    """
    tm, _, nWh, twoD = x_ref.shape
    rows = tm * nWh
    x0 = x_ref[:, 0, :, :].reshape(rows, twoD).astype(jnp.float32)   # h = 0 half
    x1 = x_ref[:, 1, :, :].reshape(rows, twoD).astype(jnp.float32)   # h = 1 half
    k = 2.0 * twoD                                                   # = 4D
    s1 = jnp.sum(x0, axis=-1, keepdims=True) + jnp.sum(x1, axis=-1, keepdims=True)
    s2 = (jnp.sum(x0 * x0, axis=-1, keepdims=True)
          + jnp.sum(x1 * x1, axis=-1, keepdims=True))
    mean = s1 * (1.0 / k)
    var = jnp.maximum(s2 * (1.0 / k) - mean * mean, 0.0)
    inv = jax.lax.rsqrt(var + LN_EPS)
    xn0 = (x0 - mean) * inv
    xn1 = (x1 - mean) * inv
    y = jnp.dot(xn0.astype(w0_ref.dtype), w0_ref[...],
                preferred_element_type=jnp.float32)
    y = y + jnp.dot(xn1.astype(w1_ref.dtype), w1_ref[...],
                    preferred_element_type=jnp.float32)
    y = y + b_ref[...].astype(jnp.float32)
    o_ref[...] = y.reshape(o_ref.shape).astype(o_ref.dtype)


# ----------------------------- kernel wrappers ------------------------------ #
def _ln_linear(x2d, w, bias, *, budget, vmem_limit):
    """x2d: (M, K), w: (K, Np), bias: (1, Np) -> (M, Np)."""
    M, K = x2d.shape
    Np = w.shape[1]
    xb = jnp.dtype(x2d.dtype).itemsize
    per_row = K * xb * 2 + K * 4 * 2 + K * 2 + Np * 4 + Np * xb * 2
    rows_target = max(_MIN_ROWS, min(_MAX_ROWS, budget // max(per_row, 1)))
    tm, _ = _pick_steps(M, rows_target)
    tm = _round_up(tm, 8)                       # sublane alignment of the row tile
    nsteps = _cdiv(M, tm)
    Mp = nsteps * tm
    if Mp != M:
        x2d = jnp.pad(x2d, ((0, Mp - M), (0, 0)))
    # NOTE: for very large D, the constant-index w/b specs could be single-
    # buffered (pipeline_mode=pl.Buffered(1)) to free VMEM on v7x.
    out = pl.pallas_call(
        _ln_linear_kernel,
        out_shape=jax.ShapeDtypeStruct((Mp, Np), x2d.dtype),
        grid_spec=pltpu.PrefetchScalarGridSpec(
            num_scalar_prefetch=0,
            grid=(nsteps,),
            in_specs=[
                pl.BlockSpec((tm, K), lambda i: (i, 0)),
                pl.BlockSpec((K, Np), lambda i: (0, 0)),
                pl.BlockSpec((1, Np), lambda i: (0, 0)),
            ],
            out_specs=pl.BlockSpec((tm, Np), lambda i: (i, 0)),
        ),
        compiler_params=pltpu.CompilerParams(
            dimension_semantics=("parallel",),
            vmem_limit_bytes=vmem_limit),
    )(x2d, w, bias)
    return out[:M] if Mp != M else out


def _merged_ln_linear(x4, w0, w1, bias, *, out_dtype, budget, vmem_limit):
    """x4: (M2, 2, nWh, 2D), w0/w1: (2D, Np), bias: (1, Np) -> (M2, nWh, Np)."""
    M2, _, nWh, twoD = x4.shape
    Np = w0.shape[1]
    xb = jnp.dtype(x4.dtype).itemsize
    ob = jnp.dtype(out_dtype).itemsize
    fourD = 2 * twoD
    per_row = (fourD * xb * 2        # input slab, double-buffered
               + fourD * 4 * 2       # x0/x1 + xn0/xn1 f32 temporaries
               + fourD * 2           # bf16 casts of the matmul operands
               + Np * 4              # f32 accumulator
               + Np * ob * 2)        # output tile, double-buffered
    rows_target = max(_MIN_ROWS, min(_MAX_ROWS, budget // max(per_row, 1)))
    outer_target = max(1, rows_target // nWh)
    tm, nsteps = _pick_steps(M2, outer_target)
    Mp = nsteps * tm
    if Mp != M2:
        # Only hit when M2 % nsteps != 0; costs one extra (small) HBM copy.
        x4 = jnp.pad(x4, ((0, Mp - M2), (0, 0), (0, 0), (0, 0)))
    out = pl.pallas_call(
        _merge_ln_linear_kernel,
        out_shape=jax.ShapeDtypeStruct((Mp, nWh, Np), out_dtype),
        grid_spec=pltpu.PrefetchScalarGridSpec(
            num_scalar_prefetch=0,
            grid=(nsteps,),
            in_specs=[
                pl.BlockSpec((tm, 2, nWh, twoD), lambda i: (i, 0, 0, 0)),
                pl.BlockSpec((twoD, Np), lambda i: (0, 0)),
                pl.BlockSpec((twoD, Np), lambda i: (0, 0)),
                pl.BlockSpec((1, Np), lambda i: (0, 0)),
            ],
            out_specs=pl.BlockSpec((tm, nWh, Np), lambda i: (i, 0, 0)),
        ),
        compiler_params=pltpu.CompilerParams(
            dimension_semantics=("parallel",),
            vmem_limit_bytes=vmem_limit),
    )(x4, w0, w1, bias)
    return out[:M2] if Mp != M2 else out


# --------------------------------- module ----------------------------------- #
def _fold_ln_into_linear(gamma, beta, w, matmul_dtype):
    """(xn*g + b) @ W  ==  xn @ (diag(g) W) + (b @ W); pad N up to 128 lanes."""
    K, N = w.shape
    Np = _round_up(N, 128)
    w_f = gamma[:, None].astype(jnp.float32) * w.astype(jnp.float32)
    b_f = beta[None, :].astype(jnp.float32) @ w.astype(jnp.float32)   # (1, N)
    if Np != N:
        w_f = jnp.pad(w_f, ((0, 0), (0, Np - N)))
        b_f = jnp.pad(b_f, ((0, 0), (0, Np - N)))
    return w_f.astype(matmul_dtype), b_f.astype(jnp.float32)


class PatchMerging3DPallas:
    """Deterministic-weight JAX/Pallas replica of PatchMerging3D."""

    def __init__(self, input_dim: int, key=None, matmul_dtype=jnp.bfloat16):
        if key is None:
            key = jax.random.PRNGKey(0)
        k1, k2 = jax.random.split(key)
        D = input_dim
        self.input_dim = D
        # nn.Linear(4D, 2D, bias=False) -> stored as (in, out) for x @ W
        self.reduction_w = jax.random.normal(k1, (4 * D, 2 * D), jnp.float32) * 0.02
        # nn.LayerNorm(4D)
        self.norm_gamma = jnp.ones((4 * D,), jnp.float32)
        self.norm_beta = jnp.zeros((4 * D,), jnp.float32)
        # nn.LayerNorm(D)
        self.id_norm_gamma = jnp.ones((D,), jnp.float32)
        self.id_norm_beta = jnp.zeros((D,), jnp.float32)
        # nn.Linear(D, 2D, bias=False)
        self.id_expansion_w = jax.random.normal(k2, (D, 2 * D), jnp.float32) * 0.02

        # Pre-folded, lane-padded, bf16 kernel parameters.
        w_m, b_m = _fold_ln_into_linear(
            self.norm_gamma, self.norm_beta, self.reduction_w, matmul_dtype)
        # 4D feature order is (h, w, D): rows [0:2D] pair with the h=0 half,
        # rows [2D:4D] with the h=1 half -> split once here.
        self._merge_w0 = w_m[: 2 * D]
        self._merge_w1 = w_m[2 * D:]
        self._merge_b = b_m
        self._id_w, self._id_b = _fold_ln_into_linear(
            self.id_norm_gamma, self.id_norm_beta, self.id_expansion_w, matmul_dtype)

    def __call__(self, x, input_resolution):
        C, H, W = input_resolution
        B, L, D = x.shape
        assert L == C * H * W, f"Input shape mismatch: {L} != {C}*{H}*{W}"
        N = 2 * self.input_dim
        budget, vmem_limit = _vmem_budget()

        if H <= 1 or W <= 1:
            # identity path: LayerNorm(D) + Linear(D -> 2D)
            out = _ln_linear(x.reshape(B * L, D), self._id_w, self._id_b,
                             budget=budget, vmem_limit=vmem_limit)
            return out[:, :N].reshape(B, L, N)

        # --- merge path: 2x2 rearrange fused into the kernel's BlockSpec ---
        xg = x.reshape(B * C, H, W, D)
        # TODO(synk): apply_or_remove_3d_padding source not provided; assuming
        # trailing zero-padding on odd H/W.
        if (H % 2) or (W % 2):
            xg = jnp.pad(xg, ((0, 0), (0, H % 2), (0, W % 2), (0, 0)))
        nH, nW = xg.shape[1], xg.shape[2]
        nH2, nWh = nH // 2, nW // 2
        # Free (contiguous) reshape: (BC, nH, nW, D) -> (BC*nH2, 2, nWh, 2D).
        x4 = xg.reshape(B * C * nH2, 2, nWh, 2 * D)
        out3 = _merged_ln_linear(x4, self._merge_w0, self._merge_w1,
                                 self._merge_b, out_dtype=x.dtype,
                                 budget=budget, vmem_limit=vmem_limit)
        # Lane-padded Np sliced back to N (extra pass only when 2D % 128 != 0).
        out = out3[..., :N].reshape(B, C * nH2 * nWh, N)
        return out


# -------------------------------- reference --------------------------------- #
def _reference(module, x, res):
    C, H, W = res
    B, L, D = x.shape

    def ln(v, g, b):
        mean = jnp.mean(v, -1, keepdims=True)
        var = jnp.mean((v - mean) ** 2, -1, keepdims=True)
        return (v - mean) / jnp.sqrt(var + LN_EPS) * g + b

    if H <= 1 or W <= 1:
        return ln(x, module.id_norm_gamma, module.id_norm_beta) @ module.id_expansion_w
    xg = x.reshape(B, C, H, W, D)
    if (H % 2) or (W % 2):
        xg = jnp.pad(xg, ((0, 0), (0, 0), (0, H % 2), (0, W % 2), (0, 0)))
    nC, nH, nW = xg.shape[1], xg.shape[2], xg.shape[3]
    xg = xg.reshape(B, nC, nH // 2, 2, nW // 2, 2, D)
    xg = jnp.transpose(xg, (0, 1, 2, 4, 3, 5, 6))          # B C H W h w D
    merged = xg.reshape(B, nC * (nH // 2) * (nW // 2), 4 * D)
    return ln(merged, module.norm_gamma, module.norm_beta) @ module.reduction_w


if __name__ == "__main__":
    key = jax.random.PRNGKey(0)
    kx, kw = jax.random.split(key)

    B, C, H, W, D = 2, 4, 16, 16, 32
    x = jax.random.normal(kx, (B, C * H * W, D), jnp.float32)
    module = PatchMerging3DPallas(input_dim=D, key=kw)

    # merge path
    out = jax.block_until_ready(module(x, (C, H, W)))
    ref = _reference(module, x, (C, H, W))
    assert out.shape == (B, C * (H // 2) * (W // 2), 2 * D), out.shape
    # bf16 MXU operands -> slightly looser tolerance than pure-f32 reference
    assert jnp.allclose(out, ref, atol=2e-2, rtol=2e-2), float(
        jnp.max(jnp.abs(out - ref)))

    # identity path (H <= 1)
    x_id = jax.random.normal(kx, (B, C * 1 * W, D), jnp.float32)
    out_id = jax.block_until_ready(module(x_id, (C, 1, W)))
    ref_id = _reference(module, x_id, (C, 1, W))
    assert out_id.shape == (B, C * W, 2 * D), out_id.shape
    assert jnp.allclose(out_id, ref_id, atol=2e-2, rtol=2e-2), float(
        jnp.max(jnp.abs(out_id - ref_id)))

    print("KERNEL_OK")
</pallas_src>

<mosaic_0001>
module attributes {stable_mosaic.version = 11 : i64} {
  func.func @_merge_ln_linear_kernel(%arg0: i32, %arg1: memref<32x2x8x64xf32, #tpu.memory_space<vmem>>, %arg2: memref<64x128xbf16, #tpu.memory_space<vmem>>, %arg3: memref<64x128xbf16, #tpu.memory_space<vmem>>, %arg4: memref<1x128xf32, #tpu.memory_space<vmem>>, %arg5: memref<32x8x128xf32, #tpu.memory_space<vmem>>) attributes {dimension_semantics = [#tpu.dimension_semantics<parallel>], iteration_bounds = array<i64: 2>, scalar_prefetch = 0 : i64, scratch_operands = 0 : i64, tpu.core_type = #tpu.core_type<tc>, window_params = [{transform_indices = @transform_0, window_bounds = array<i64: 32, 2, 8, 64>}, {pipeline_mode = #tpu.pipeline_mode<synchronous>, transform_indices = @transform_1, window_bounds = array<i64: 64, 128>}, {pipeline_mode = #tpu.pipeline_mode<synchronous>, transform_indices = @transform_2, window_bounds = array<i64: 64, 128>}, {pipeline_mode = #tpu.pipeline_mode<synchronous>, transform_indices = @transform_3, window_bounds = array<i64: 1, 128>}, {transform_indices = @transform_4, window_bounds = array<i64: 32, 8, 128>}]} {
    %c0 = arith.constant 0 : index
    %c0_0 = arith.constant 0 : index
    %c0_1 = arith.constant 0 : index
    %c0_2 = arith.constant 0 : index
    %0 = vector.load %arg1[%c0, %c0_0, %c0_1, %c0_2] : memref<32x2x8x64xf32, #tpu.memory_space<vmem>>, vector<32x1x8x64xf32>
    %1 = vector.shape_cast %0 : vector<32x1x8x64xf32> to vector<32x8x64xf32>
    %2 = vector.shape_cast %1 : vector<32x8x64xf32> to vector<256x64xf32>
    %c0_3 = arith.constant 0 : index
    %c1 = arith.constant 1 : index
    %c0_4 = arith.constant 0 : index
    %c0_5 = arith.constant 0 : index
    %3 = vector.load %arg1[%c0_3, %c1, %c0_4, %c0_5] : memref<32x2x8x64xf32, #tpu.memory_space<vmem>>, vector<32x1x8x64xf32>
    %4 = vector.shape_cast %3 : vector<32x1x8x64xf32> to vector<32x8x64xf32>
    %5 = vector.shape_cast %4 : vector<32x8x64xf32> to vector<256x64xf32>
    %cst = arith.constant dense<0.000000e+00> : vector<256xf32>
    %6 = vector.multi_reduction <add>, %2, %cst [1] : vector<256x64xf32> to vector<256xf32>
    %7 = vector.shape_cast %6 : vector<256xf32> to vector<256x1xf32>
    %cst_6 = arith.constant dense<0.000000e+00> : vector<256xf32>
    %8 = vector.multi_reduction <add>, %5, %cst_6 [1] : vector<256x64xf32> to vector<256xf32>
    %9 = vector.shape_cast %8 : vector<256xf32> to vector<256x1xf32>
    %10 = arith.addf %7, %9 : vector<256x1xf32>
    %11 = arith.mulf %2, %2 : vector<256x64xf32>
    %cst_7 = arith.constant dense<0.000000e+00> : vector<256xf32>
    %12 = vector.multi_reduction <add>, %11, %cst_7 [1] : vector<256x64xf32> to vector<256xf32>
    %13 = vector.shape_cast %12 : vector<256xf32> to vector<256x1xf32>
    %14 = arith.mulf %5, %5 : vector<256x64xf32>
    %cst_8 = arith.constant dense<0.000000e+00> : vector<256xf32>
    %15 = vector.multi_reduction <add>, %14, %cst_8 [1] : vector<256x64xf32> to vector<256xf32>
    %16 = vector.shape_cast %15 : vector<256xf32> to vector<256x1xf32>
    %17 = arith.addf %13, %16 : vector<256x1xf32>
    %cst_9 = arith.constant 7.812500e-03 : f32
    %18 = vector.broadcast %cst_9 : f32 to vector<256x1xf32>
    %19 = arith.mulf %10, %18 : vector<256x1xf32>
    %cst_10 = arith.constant 7.812500e-03 : f32
    %20 = vector.broadcast %cst_10 : f32 to vector<256x1xf32>
    %21 = arith.mulf %17, %20 : vector<256x1xf32>
    %22 = arith.mulf %19, %19 : vector<256x1xf32>
    %23 = arith.subf %21, %22 : vector<256x1xf32>
    %cst_11 = arith.constant 0.000000e+00 : f32
    %24 = vector.broadcast %cst_11 : f32 to vector<256x1xf32>
    %25 = arith.maximumf %23, %24 : vector<256x1xf32>
    %cst_12 = arith.constant 9.99999974E-6 : f32
    %26 = vector.broadcast %cst_12 : f32 to vector<256x1xf32>
    %27 = arith.addf %25, %26 : vector<256x1xf32>
    %28 = math.rsqrt %27 : vector<256x1xf32>
    %29 = vector.broadcast %19 : vector<256x1xf32> to vector<256x64xf32>
    %30 = arith.subf %2, %29 : vector<256x64xf32>
    %31 = vector.broadcast %28 : vector<256x1xf32> to vector<256x64xf32>
    %32 = arith.mulf %30, %31 : vector<256x64xf32>
    %33 = vector.broadcast %19 : vector<256x1xf32> to vector<256x64xf32>
    %34 = arith.subf %5, %33 : vector<256x64xf32>
    %35 = vector.broadcast %28 : vector<256x1xf32> to vector<256x64xf32>
    %36 = arith.mulf %34, %35 : vector<256x64xf32>
    %37 = arith.truncf %32 : vector<256x64xf32> to vector<256x64xbf16>
    %c0_13 = arith.constant 0 : index
    %c0_14 = arith.constant 0 : index
    %38 = vector.load %arg2[%c0_13, %c0_14] : memref<64x128xbf16, #tpu.memory_space<vmem>>, vector<64x128xbf16>
    %cst_15 = arith.constant dense<0.000000e+00> : vector<256x128xf32>
    %39 = tpu.matmul %37, %38, %cst_15 {dimension_numbers = #tpu.dot_dimension_numbers<[1], [0], [0], [1], [0, 0, 1, 1], [], []>} : vector<256x64xbf16>, vector<64x128xbf16>, vector<256x128xf32> -> vector<256x128xf32>
    %40 = arith.truncf %36 : vector<256x64xf32> to vector<256x64xbf16>
    %c0_16 = arith.constant 0 : index
    %c0_17 = arith.constant 0 : index
    %41 = vector.load %arg3[%c0_16, %c0_17] : memref<64x128xbf16, #tpu.memory_space<vmem>>, vector<64x128xbf16>
    %cst_18 = arith.constant dense<0.000000e+00> : vector<256x128xf32>
    %42 = tpu.matmul %40, %41, %cst_18 {dimension_numbers = #tpu.dot_dimension_numbers<[1], [0], [0], [1], [0, 0, 1, 1], [], []>} : vector<256x64xbf16>, vector<64x128xbf16>, vector<256x128xf32> -> vector<256x128xf32>
    %43 = arith.addf %39, %42 : vector<256x128xf32>
    %c0_19 = arith.constant 0 : index
    %c0_20 = arith.constant 0 : index
    %44 = vector.load %arg4[%c0_19, %c0_20] : memref<1x128xf32, #tpu.memory_space<vmem>>, vector<1x128xf32>
    %45 = vector.broadcast %44 : vector<1x128xf32> to vector<256x128xf32>
    %46 = arith.addf %43, %45 : vector<256x128xf32>
    %47 = vector.shape_cast %46 : vector<256x128xf32> to vector<32x8x128xf32>
    %c0_21 = arith.constant 0 : index
    %c0_22 = arith.constant 0 : index
    %c0_23 = arith.constant 0 : index
    %48 = vector.load %arg5[%c0_21, %c0_22, %c0_23] : memref<32x8x128xf32, #tpu.memory_space<vmem>>, vector<32x8x128xf32>
    tpu.vector_store %arg5[%c0_21, %c0_22, %c0_23], %47 {strides = array<i32>} : memref<32x8x128xf32, #tpu.memory_space<vmem>>, vector<32x8x128xf32>,
    return
  }
  func.func @transform_0(%arg0: i32) -> (i32, i32, i32, i32) {
    %c0_i32 = arith.constant 0 : i32
    %c0_i32_0 = arith.constant 0 : i32
    %c0_i32_1 = arith.constant 0 : i32
    %c0_i32_2 = arith.constant 0 : i32
    return %arg0, %c0_i32, %c0_i32_0, %c0_i32_1 : i32, i32, i32, i32
  }
  func.func @transform_1(%arg0: i32) -> (i32, i32) {
    %c0_i32 = arith.constant 0 : i32
    %c0_i32_0 = arith.constant 0 : i32
    %c0_i32_1 = arith.constant 0 : i32
    return %c0_i32, %c0_i32_0 : i32, i32
  }
  func.func @transform_2(%arg0: i32) -> (i32, i32) {
    %c0_i32 = arith.constant 0 : i32
    %c0_i32_0 = arith.constant 0 : i32
    %c0_i32_1 = arith.constant 0 : i32
    return %c0_i32, %c0_i32_0 : i32, i32
  }
  func.func @transform_3(%arg0: i32) -> (i32, i32) {
    %c0_i32 = arith.constant 0 : i32
    %c0_i32_0 = arith.constant 0 : i32
    %c0_i32_1 = arith.constant 0 : i32
    return %c0_i32, %c0_i32_0 : i32, i32
  }
  func.func @transform_4(%arg0: i32) -> (i32, i32, i32) {
    %c0_i32 = arith.constant 0 : i32
    %c0_i32_0 = arith.constant 0 : i32
    %c0_i32_1 = arith.constant 0 : i32
    return %arg0, %c0_i32, %c0_i32_0 : i32, i32, i32
  }
}

</mosaic_0001>

<bundles_post_ra>
// kernel: tpu_custom_call.1
= control target key start
LH: loop header
LB: loop body
LE: loop exit
PB: predicated region body
PF: predicated region fallthrough
CT: control target
= control target key end

     0   :  { %9 = vsyncpa [#allocation3], 0  ;;  %s3356_s0 = inlined_call_operand.hbm [shape: f32[64,2,8,64], index: 0, kind: input, shape index: {}]   ;;  %s3357_s1 = inlined_call_operand.hbm [shape: bf16[64,128], index: 1, kind: input, shape index: {}]   ;;  %s3358_s2 = inlined_call_operand.hbm [shape: bf16[64,128], index: 2, kind: input, shape index: {}]   ;;  %s3359_s3 = inlined_call_operand.vmem [shape: f32[1,128], index: 3, kind: input, shape index: {}]   ;;  %s3360_s4 = inlined_call_operand.hbm [shape: f32[64,8,128], index: 4, kind: output, shape index: {}]  }
   0x1   :  { %11 = vsyncpa [#allocation3 + $0x1], 0 }
   0x2   :  { %12 = vsyncpa [#allocation6], 0 }
   0x3   :  { %13 = vsyncpa [#allocation4], 0 }
   0x4   :  { %15 = vsyncpa [#allocation4 + $0x1], 0  ;;  %s2453_s15 = smov 0   ;;  %s2455_s16 = smov 0  }
   0x5   :  { %s2457_s17 = smov 0   ;;  %s2459_s18 = smov 0  }
   0x6 LB: > { %s2474_s19 = sadd.s32 4294967295, %s2416_s18   ;;  %s1870_s20 = sadd.s32 4294967294, %s2416_s18   ;;  %s2416_s18 = sphi %s2459_s18, %s3382_s18   ;;  %s2412_s17 = sphi %s2457_s17, %s3381_s17   ;;  %s2408_s16 = sphi %s2455_s16, %s3380_s16   ;;  %s2404_s15 = sphi %s2453_s15, %s3379_s15  }
   0x7   : > { %p41_p0 = scmp.ne.s32.totalorder %s2408_s16, %s2404_s15  ;;  %p3361_p1 = scmp.eq.s32.totalorder %s2474_s19, 0 }
   0x8   : > { %p134_p3 = scmp.eq.s32.totalorder %s1870_s20, 1  ;;  %p1871_p5 = scmp.ge.s32.totalorder %s2416_s18, 1 }
   0x9   : > { %p2483_p4 = por %p3361_p1, %p41_p0  ;;  %p141_p7 = scmp.lt.s32.totalorder %s2416_s18, 3 }
   0xa   : > { %p2488_p6 = por %p134_p3, %p41_p0  ;;  %s2418_s24 = smov [#allocation5]  }
   0xb   : > { %s3365_s21 = scalar_select %p2483_p4, 1, 0 }
   0xc   : > { %s3366_s22 = scalar_select %p2488_p6, 1, 0 }
   0xd   : > { %p2493_p8 = pnand %p1871_p5, %p141_p7  ;;  %s153_s25 = sshll.u32 %s2418_s24, 4  ;;  %s154_s25 = int_to_ptr.vmem [resolvable:$true] %s153_s25 }
   0xe   : > { %s2419_s27 = smov [#allocation7]   ;;  %s2279_s29 = scalar_lea.vmem %s154_s25, 512 }
   0xf   : > { %s3367_s23 = scalar_select %p2493_p8, 1, 0 }
  0x10   : > { %p2097_p9 = pneg %p2493_p8  ;;  %s166_s28 = sshll.u32 %s2419_s27, 4  ;;  %s167_s28 = int_to_ptr.vmem [resolvable:$true] %s166_s28 }
  0x11   : > { %p2280_p13 = scmp.ne.s32.totalorder %s154_s25, %s2279_s29  ;;  %p2287_p5 = scmp.lt.s32.totalorder %s154_s25, %s154_s25 }
  0x12   : > { %p2502_p11 = pnand %p2097_p9, %p3361_p1  ;;  %p2288_p7 = scmp.lt.s32.totalorder %s2279_s29, %s2279_s29 }
  0x14   : > { %p2270_p12 = pneg %p2502_p11  ;;  %p2289_p10 = por %p2288_p7, %p2287_p5 }
  0x16   : > { %p2282_p0 = pnand %p2280_p13, %p2270_p12 }
  0x18   : > { %p2283_p3 = pneg %p2282_p0 }
  0x1a   : > { %p2290_p9 = pnand %p2289_p10, %p2283_p3 }
  0x1c   : > { %2293 = shalt.err (!%p2290_p9)
}
  0x1d   : > { %s2420_s30 = smov 64   ;;  %s2421_s5 = smov 4  }
  0x1e   : > { %2100 = dma.hbm_to_vmem [thread:$0]  (!%p2502_p11), %s3357_s1, 512, %s154_s25, [#allocation6], %s2420_s30, %s2420_s30, %s2421_s5  }
  0x1f   : > { %s2305_s8 = scalar_lea.vmem %s167_s28, 512  ;;  %p2313_p2 = scmp.lt.s32.totalorder %s167_s28, %s167_s28 }
  0x20   : > { %p2306_p1 = scmp.ne.s32.totalorder %s167_s28, %s2305_s8  ;;  %p2314_p6 = scmp.lt.s32.totalorder %s2305_s8, %s2305_s8 }
  0x22   : > { %p2308_p13 = pnand %p2306_p1, %p2270_p12  ;;  %p2315_p5 = por %p2314_p6, %p2313_p2 }
  0x24   : > { %p2309_p0 = pneg %p2308_p13 }
  0x26   : > { %p2316_p10 = pnand %p2315_p5, %p2309_p0 }
  0x28   : > { %2319 = shalt.err (!%p2316_p10)
}
  0x29   : > { %2103 = dma.hbm_to_vmem [thread:$0]  (!%p2502_p11), %s3358_s2, 512, %s167_s28, [#allocation6], %s2420_s30, %s2420_s30, %s2421_s5  }
  0x2a   : > { %s2525_s11 = sadd.s32 1, %s2416_s18   ;;  %s28_s12 = sadd.s32 1, %s2412_s17 }
  0x2b   : > { %s25_s13 = ssub.s32 %s2416_s18, %s2525_s11  ;;  %p35_p1 = scmp.ne.s32.totalorder %s2412_s17, %s2408_s16 }
  0x2c   : > { %p26_p2 = scmp.eq.s32.totalorder %s25_s13, 0  ;;  %p36_p6 = scmp.eq.s32.totalorder %s2416_s18, 0 }
  0x2d   : > { %p3369_p12 = scmp.eq.s32.totalorder %s2474_s19, 1  ;;  %p2114_p7 = scmp.lt.s32.totalorder %s2416_s18, 2 }
  0x2e   : > { %s2541_s20 = scalar_select %p26_p2, %s2412_s17, %s28_s12  }
  0x2f   : > { %p2535_p3 = por %p3369_p12, %p35_p1  ;;  %p37_p9 = por %p36_p6, %p35_p1 }
  0x30   : > { %s183_s24 = sand.u32 1, %s2412_s17   ;;  %s1963_s26 = sshll.u32 %s2416_s18, 13 }
  0x31   : > { %s3370_s14 = scalar_select %p2535_p3, 1, 0 }
  0x32   : > { %s1875_s25 = sshll.u32 %s183_s24, 9  ;;  %s2548_s29 = scalar_lea.hbm %s3356_s0, %s1963_s26 }
  0x33   : > { %s187_s30 = scalar_lea.vmem [#allocation2], %s1875_s25  ;;  %p2552_p11 = pnand %p2114_p7, %p37_p9 }
  0x34   : > { %s195_s5 = sshll.u32 %s187_s30, 4  ;;  %s2556_s7 = scalar_lea.sflag [#allocation3], %s183_s24  ;;  %s2550_s5 = int_to_ptr.vmem [resolvable:$true] %s195_s5 }
  0x35   : > { %s2320_s8 = scalar_lea.hbm %s2548_s29, 8192  ;;  %p2322_p0 = pneg %p2552_p11 }
  0x36   : > { %p2321_p13 = scmp.ne.s32.totalorder %s2548_s29, %s2320_s8  ;;  %s2325_s12 = scalar_lea.hbm %s3356_s0, 16384 }
  0x37   : > { %p2326_p1 = scmp.lt.s32.totalorder %s2548_s29, %s3356_s0  ;;  %p2327_p2 = scmp.lt.s32.totalorder %s2325_s12, %s2320_s8 }
  0x38   : > { %p2323_p5 = pnand %p2322_p0, %p2321_p13 }
  0x39   : > { %p2328_p6 = por %p2327_p2, %p2326_p1 }
  0x3a   : > { %p2324_p10 = pneg %p2323_p5 }
  0x3c   : > { %p2329_p12 = pnand %p2328_p6, %p2324_p10 }
  0x3e   : > { %2332 = shalt.err (!%p2329_p12)
}
  0x3f   : > { %s2333_s24 = scalar_lea.vmem %s2550_s5, 8192  ;;  %s2422_s26 = smov [#allocation2]  }
  0x40   : > { %p2334_p7 = scmp.ne.s32.totalorder %s2550_s5, %s2333_s24  ;;  %s2338_s27 = sshll.u32 %s2422_s26, 4  ;;  %s2339_s27 = int_to_ptr.vmem [resolvable:$false] %s2338_s27 }
  0x41   : > { %s2340_s28 = scalar_lea.vmem %s2339_s27, 16384  ;;  %p2341_p5 = scmp.lt.s32.totalorder %s2550_s5, %s2339_s27 }
  0x42   : > { %p2336_p9 = pnand %p2334_p7, %p2322_p0  ;;  %p2342_p3 = scmp.lt.s32.totalorder %s2340_s28, %s2333_s24 }
  0x44   : > { %p2337_p13 = pneg %p2336_p9  ;;  %p2343_p4 = por %p2342_p3, %p2341_p5 }
  0x46   : > { %p2344_p8 = pnand %p2343_p4, %p2337_p13 }
  0x48   : > { %2347 = shalt.err (!%p2344_p8)
}
  0x49   : > { %s2423_s30 = smov 128   ;;  %s2424_s8 = smov 8  }
  0x4a   : > { %2107 = dma.hbm_to_vmem [thread:$0]  (!%p2552_p11), %s2548_s29, 8192, %s2550_s5, %s2556_s7, %s2423_s30, %s2423_s30, %s2424_s8  }
  0x4b   : > { %p3372_p0 = scmp.ne.s32.totalorder %s3367_s23, 0 }
  0x4c   : > { %s2580_s9 = sand.u32 (!%p3372_p0), 1, %s2408_s16   ;;  %p3373_p4 = scmp.ne.s32.totalorder (!%p3372_p0), %s3365_s21, 0 }
  0x4d   : > { %207 = sbr.rel (%p3372_p0) target bundleno = 725 (0x2d5), region = 36  ;;  %s1880_s10 = sshll.u32 (!%p3372_p0), %s2580_s9, 9 }
  0x4e   : > { %s210_s12 = scalar_lea.sflag (!%p3372_p0), [#allocation3], %s2580_s9  ;;  %s2584_s13 = scalar_lea.vmem (!%p3372_p0), [#allocation2], %s1880_s10 }
  0x52   : > { %2391 = dma.done.wait (%p3373_p4), %s210_s12, 8192  }
  0x53   : > { %2393 = vsyncadd (%p3373_p4), %s210_s12, 4294959104  ;;  %p3374_p8 = scmp.eq.s32.totalorder %s2474_s19, 0 }
  0x55   : > { %2395 = dma.done.wait (%p3374_p8), [#allocation6], 1024   ;;  %p3375_p3 = pmov %p3374_p8 }
  0x56   : > { %vm314_vm0 = vcmask 523264   ;;  %v2595_v0 = vld [vmem:[%s2584_s13 + $0x8] sm:$0xff]  ;;  %v2598_v1 = vld [vmem:[%s2584_s13] sm:$0xff]  ;;  %v2601_v2 = vld [vmem:[%s2584_s13 + $0x18] sm:$0xff]  ;;  %s1883_s21 = sshll.u32 %s2580_s9, 8  ;;  %s1964_s6 = sshll.u32 %s2474_s19, 12 }
  0x57   : > { %2397 = vsyncadd (%p3375_p3), [#allocation6], 4294966272  ;;  %v411_v3 = vsel %vm314_vm0, %v2595_v0, 0.0  ;;  %v315_v4 = vsel %vm314_vm0, %v2598_v1, 0.0  ;;  %v2608_v5 = vld [vmem:[%s2584_s13 + $0x10] sm:$0xff]  ;;  %v414_v6 = vsel %vm314_vm0, %v2601_v2, 0.0  ;;  %v539_v17 = vmul.f32 %v2598_v1, %v2598_v1  ;;  %s3308_s26 = scalar_lea.hbm %s3360_s4, %s1964_s6 }
  0x58   : > { %412 = vadd.xlane.f32.xlu1 %v411_v3  ;;  %316 = vadd.xlane.f32.xlu0 %v315_v4  ;;  %v318_v7 = vsel %vm314_vm0, %v2608_v5, 0.0  ;;  %v2615_v8 = vld [vmem:[%s2584_s13 + $0x30] sm:$0xff]  ;;  %v2618_v9 = vld [vmem:[%s2584_s13 + $0x20] sm:$0xff]  ;;  %v2625_v12 = vld [vmem:[%s2584_s13 + $0x38] sm:$0xff]  ;;  %v540_v16 = vmul.f32 %v2608_v5, %v2608_v5  ;;  %v668_v20 = vmul.f32 %v2601_v2, %v2601_v2  ;;  %v667_v21 = vmul.f32 %v2595_v0, %v2595_v0  ;;  %s3217_s5 = scalar_lea.vmem [#allocation8], %s1883_s21  ;;  %s1765_s19 = scalar_lea.sflag [#allocation4], %s2580_s9 }
  0x59   : > { %v324_v10 = vsel %vm314_vm0, %v2615_v8, 0.0  ;;  %v321_v11 = vsel %vm314_vm0, %v2618_v9, 0.0  ;;  %v2628_v13 = vld [vmem:[%s2584_s13 + $0x28] sm:$0xff]  ;;  %v420_v14 = vsel %vm314_vm0, %v2625_v12, 0.0  ;;  %v571_v19 = vsel %vm314_vm0, %v539_v17, 0.0  ;;  %v2659_v32 = vld [vmem:[%s2584_s13 + $0x50] sm:$0xff] }
  0x5a   : > { %v417_v15 = vsel %vm314_vm0, %v2628_v13, 0.0  ;;  %v574_v18 = vsel %vm314_vm0, %v540_v16, 0.0  ;;  %v702_v22 = vsel %vm314_vm0, %v668_v20, 0.0  ;;  %v699_v23 = vsel %vm314_vm0, %v667_v21, 0.0  ;;  %v2662_v33 = vld [vmem:[%s2584_s13 + $0x40] sm:$0xff]  ;;  %v2669_v36 = vld [vmem:[%s2584_s13 + $0x58] sm:$0xff] }
  0x5b   : > { %v542_v24 = vmul.f32 %v2615_v8, %v2615_v8  ;;  %v541_v25 = vmul.f32 %v2618_v9, %v2618_v9  ;;  %v670_v28 = vmul.f32 %v2625_v12, %v2625_v12  ;;  %v669_v29 = vmul.f32 %v2628_v13, %v2628_v13  ;;  %v2672_v37 = vld [vmem:[%s2584_s13 + $0x48] sm:$0xff]  ;;  %v2679_v40 = vld [vmem:[%s2584_s13 + $0x70] sm:$0xff]  ;;  %v2682_v41 = vld [vmem:[%s2584_s13 + $0x60] sm:$0xff]  ;;  %s1778_s7 = sshll.u32 %s3217_s5, 4  ;;  %p3376_p10 = scmp.ne.s32.totalorder %s3370_s14, 0  ;;  %s3310_s7 = int_to_ptr.vmem [resolvable:$true] %s1778_s7 }
  0x5c   : > { %415 = vadd.xlane.f32.xlu1 %v414_v6  ;;  %319 = vadd.xlane.f32.xlu0 %v318_v7  ;;  %v330_v34 = vsel %vm314_vm0, %v2659_v32, 0.0  ;;  %v327_v35 = vsel %vm314_vm0, %v2662_v33, 0.0  ;;  %v426_v38 = vsel %vm314_vm0, %v2669_v36, 0.0  ;;  %v423_v39 = vsel %vm314_vm0, %v2672_v37, 0.0  ;;  %v2689_v44 = vld [vmem:[%s2584_s13 + $0x78] sm:$0xff]  ;;  %v2692_v45 = vld [vmem:[%s2584_s13 + $0x68] sm:$0xff] }
  0x5d   : > { %v580_v26 = vsel %vm314_vm0, %v542_v24, 0.0  ;;  %v577_v27 = vsel %vm314_vm0, %v541_v25, 0.0  ;;  %v708_v30 = vsel %vm314_vm0, %v670_v28, 0.0  ;;  %v705_v31 = vsel %vm314_vm0, %v669_v29, 0.0  ;;  %v2158_v58 = vld [vmem:[#allocation7 + $0x18] sm:$0xff]   ;;  %v2160_v3 = vld [vmem:[#allocation7 + $0x10] sm:$0xff]  }
  0x5e   : > { %v336_v42 = vsel %vm314_vm0, %v2679_v40, 0.0  ;;  %v333_v43 = vsel %vm314_vm0, %v2682_v41, 0.0  ;;  %v432_v46 = vsel %vm314_vm0, %v2689_v44, 0.0  ;;  %v429_v47 = vsel %vm314_vm0, %v2692_v45, 0.0  ;;  %v2159_v59 = vld [vmem:[#allocation5 + $0x18] sm:$0xff]   ;;  %2005 = vmatprep.subr.bf16.mxu0 %v2158_v58  ;;  %v2161_v4 = vld [vmem:[#allocation5 + $0x10] sm:$0xff]  }
  0x5f   : > { %v544_v48 = vmul.f32 %v2659_v32, %v2659_v32  ;;  %v543_v49 = vmul.f32 %v2662_v33, %v2662_v33  ;;  %v672_v52 = vmul.f32 %v2669_v36, %v2669_v36  ;;  %v671_v53 = vmul.f32 %v2672_v37, %v2672_v37  ;;  %2045 = vmatprep.subr.bf16.mxu1 %v2159_v59  ;;  %v2730_v20 = vld [vmem:[%s2584_s13 + $0x98] sm:$0xff]  ;;  %v2733_v21 = vld [vmem:[%s2584_s13 + $0x88] sm:$0xff]  ;;  %v260_v24 = vld [vmem:[%s2584_s13 + $0xb0] sm:$0xff]  ;;  %s2348_s27 = scalar_lea.vmem %s3310_s7, 4096  ;;  %s2425_s28 = smov [#allocation8]  }
  0x60   : > { %325 = vadd.xlane.f32.xlu1 %v324_v10  ;;  %322 = vadd.xlane.f32.xlu0 %v321_v11  ;;  %v546_v56 = vmul.f32 %v2679_v40, %v2679_v40  ;;  %v545_v57 = vmul.f32 %v2682_v41, %v2682_v41  ;;  %v674_v62 = vmul.f32 %v2689_v44, %v2689_v44  ;;  %v2162_v10 = vld [vmem:[#allocation7 + $0x8] sm:$0xff]   ;;  %v259_v25 = vld [vmem:[%s2584_s13 + $0xa0] sm:$0xff]  ;;  %v2744_v28 = vld [vmem:[%s2584_s13 + $0xb8] sm:$0xff]  ;;  %p2349_p11 = scmp.ne.s32.totalorder %s3310_s7, %s2348_s27  ;;  %s2352_s30 = sshll.u32 %s2425_s28, 4  ;;  %s2353_s30 = int_to_ptr.vmem [resolvable:$false] %s2352_s30 }
  0x61   : > { %v586_v50 = vsel %vm314_vm0, %v544_v48, 0.0  ;;  %v583_v51 = vsel %vm314_vm0, %v543_v49, 0.0  ;;  %v714_v54 = vsel %vm314_vm0, %v672_v52, 0.0  ;;  %v711_v55 = vsel %vm314_vm0, %v671_v53, 0.0  ;;  %2006 = vmatpush3.bf16.msra.mxu0 %v2158_v58  ;;  %2046 = vmatpush3.bf16.msra.mxu1 %v2159_v59  ;;  %v2163_v11 = vld [vmem:[#allocation5 + $0x8] sm:$0xff]   ;;  %s2354_s8 = scalar_lea.vmem %s2353_s30, 8192  ;;  %p2355_p6 = scmp.lt.s32.totalorder %s3310_s7, %s2353_s30 }
  0x62   : > { %v592_v60 = vsel %vm314_vm0, %v546_v56, 0.0  ;;  %v589_v61 = vsel %vm314_vm0, %v545_v57, 0.0  ;;  %v673_v63 = vmul.f32 %v2692_v45, %v2692_v45  ;;  %2007 = vmatprep.subr.bf16.mxu0 %v2160_v3  ;;  %2047 = vmatprep.subr.bf16.mxu1 %v2161_v4  ;;  %v720_v6 = vsel %vm314_vm0, %v674_v62, 0.0  ;;  %v1894_v29 = vld [vmem:[%s2584_s13 + $0xa8] sm:$0xff]  ;;  %v262_v56 = vld [vmem:[%s2584_s13 + $0xd0] sm:$0xff]  ;;  %v261_v57 = vld [vmem:[%s2584_s13 + $0xc0] sm:$0xff]  ;;  %p2350_p1 = pnand %p2349_p11, %p3376_p10  ;;  %p2356_p12 = scmp.lt.s32.totalorder %s2354_s8, %s2348_s27 }
  0x63   : > { %v550_v48 = vmul.f32 %v260_v24, %v260_v24  ;;  %v549_v49 = vmul.f32 %v259_v25, %v259_v25  ;;  %v678_v52 = vmul.f32 %v2744_v28, %v2744_v28  ;;  %v677_v53 = vmul.f32 %v1894_v29, %v1894_v29 }
  0x64   : > { %421 = vadd.xlane.f32.xlu1 %v420_v14  ;;  %418 = vadd.xlane.f32.xlu0 %v417_v15  ;;  %v717_v7 = vsel %vm314_vm0, %v673_v63, 0.0  ;;  %v2723_v14 = vld [vmem:[%s2584_s13 + $0x90] sm:$0xff]  ;;  %v257_v15 = vld [vmem:[%s2584_s13 + $0x80] sm:$0xff]  ;;  %v354_v58 = vsel %vm314_vm0, %v262_v56, 0.0  ;;  %v351_v59 = vsel %vm314_vm0, %v261_v57, 0.0  ;;  %p2351_p2 = pneg %p2350_p1  ;;  %p2357_p7 = por %p2356_p12, %p2355_p6 }
  0x65   : > { %2008 = vmatpush3.bf16.msra.mxu0 %v2160_v3  ;;  %2048 = vmatpush3.bf16.msra.mxu1 %v2161_v4  ;;  %v342_v16 = vsel %vm314_vm0, %v2723_v14, 0.0  ;;  %v339_v17 = vsel %vm314_vm0, %v257_v15, 0.0  ;;  %v264_v3 = vld [vmem:[%s2584_s13 + $0xf0] sm:$0xff]  ;;  %v263_v4 = vld [vmem:[%s2584_s13 + $0xe0] sm:$0xff] }
  0x66   : > { %2009 = vmatprep.subr.bf16.mxu0 %v2162_v10  ;;  %2049 = vmatprep.subr.bf16.mxu1 %v2163_v11  ;;  %p2358_p9 = pnand %p2357_p7, %p2351_p2 }
  0x68   : > { %575 = vadd.xlane.f32.xlu1 %v574_v18  ;;  %572 = vadd.xlane.f32.xlu0 %v571_v19  ;;  %v2164_v18 = vld [vmem:[#allocation7] sm:$0xff]  }
  0x69   : > { %2010 = vmatpush3.bf16.msra.mxu0 %v2162_v10  ;;  %2050 = vmatpush3.bf16.msra.mxu1 %v2163_v11  ;;  %v2165_v19 = vld [vmem:[#allocation5] sm:$0xff]   ;;  %v1899_v10 = vld [vmem:[%s2584_s13 + $0xf8] sm:$0xff]  ;;  %v1898_v11 = vld [vmem:[%s2584_s13 + $0xe8] sm:$0xff] }
  0x6a   : > { %2011 = vmatprep.subr.bf16.mxu0 %v2164_v18  ;;  %2051 = vmatprep.subr.bf16.mxu1 %v2165_v19 }
  0x6c   : > { %703 = vadd.xlane.f32.xlu1 %v702_v22  ;;  %700 = vadd.xlane.f32.xlu0 %v699_v23  ;;  %v438_v22 = vsel %vm314_vm0, %v2730_v20, 0.0  ;;  %v435_v23 = vsel %vm314_vm0, %v2733_v21, 0.0 }
  0x6d   : > { %2012 = vmatpush3.bf16.msra.mxu0 %v2164_v18  ;;  %2052 = vmatpush3.bf16.msra.mxu1 %v2165_v19  ;;  %v551_v18 = vmul.f32 %v261_v57, %v261_v57  ;;  %v1902_v57 = vld [vmem:[%s2584_s13 + $0x128] sm:$0xff] }
  0x70   : > { %581 = vadd.xlane.f32.xlu1 %v580_v26  ;;  %578 = vadd.xlane.f32.xlu0 %v577_v27  ;;  %v348_v26 = vsel %vm314_vm0, %v260_v24, 0.0  ;;  %v345_v27 = vsel %vm314_vm0, %v259_v25, 0.0 }
  0x74   : > { %709 = vadd.xlane.f32.xlu1 %v708_v30  ;;  %706 = vadd.xlane.f32.xlu0 %v705_v31  ;;  %v444_v30 = vsel %vm314_vm0, %v2744_v28, 0.0  ;;  %v441_v31 = vsel %vm314_vm0, %v1894_v29, 0.0  ;;  %v553_v29 = vmul.f32 %v263_v4, %v263_v4 }
  0x78   : > { %331 = vadd.xlane.f32.xlu1 %v330_v34  ;;  %328 = vadd.xlane.f32.xlu0 %v327_v35  ;;  %v548_v34 = vmul.f32 %v2723_v14, %v2723_v14  ;;  %v547_v35 = vmul.f32 %v257_v15, %v257_v15  ;;  %v456_v15 = vsel %vm314_vm0, %v1899_v10, 0.0 }
  0x7c   : > { %427 = vadd.xlane.f32.xlu1 %v426_v38  ;;  %424 = vadd.xlane.f32.xlu0 %v423_v39  ;;  %v598_v38 = vsel %vm314_vm0, %v548_v34, 0.0  ;;  %v595_v39 = vsel %vm314_vm0, %v547_v35, 0.0  ;;  %v682_v34 = vmul.f32 %v1899_v10, %v1899_v10  ;;  %v681_v35 = vmul.f32 %v1898_v11, %v1898_v11 }
  0x80   : > { %337 = vadd.xlane.f32.xlu1 %v336_v42  ;;  %334 = vadd.xlane.f32.xlu0 %v333_v43  ;;  %v676_v42 = vmul.f32 %v2730_v20, %v2730_v20  ;;  %v675_v43 = vmul.f32 %v2733_v21, %v2733_v21 }
  0x84   : > { %433 = vadd.xlane.f32.xlu1 %v432_v46  ;;  %430 = vadd.xlane.f32.xlu0 %v429_v47  ;;  %v726_v46 = vsel %vm314_vm0, %v676_v42, 0.0  ;;  %v723_v47 = vsel %vm314_vm0, %v675_v43, 0.0  ;;  %v266_v42 = vld [vmem:[%s2584_s13 + $0x110] sm:$0xff]  ;;  %v265_v43 = vld [vmem:[%s2584_s13 + $0x100] sm:$0xff] }
  0x88   : > { %587 = vadd.xlane.f32.xlu1 %v586_v50  ;;  %584 = vadd.xlane.f32.xlu0 %v583_v51  ;;  %v604_v50 = vsel %vm314_vm0, %v550_v48, 0.0  ;;  %v601_v51 = vsel %vm314_vm0, %v549_v49, 0.0  ;;  %v1901_v48 = vld [vmem:[%s2584_s13 + $0x118] sm:$0xff]  ;;  %v1900_v49 = vld [vmem:[%s2584_s13 + $0x108] sm:$0xff] }
  0x89   : > { %v684_v10 = vmul.f32 %v1901_v48, %v1901_v48 }
  0x8c   : > { %715 = vadd.xlane.f32.xlu1 %v714_v54  ;;  %712 = vadd.xlane.f32.xlu0 %v711_v55  ;;  %v732_v54 = vsel %vm314_vm0, %v678_v52, 0.0  ;;  %v729_v55 = vsel %vm314_vm0, %v677_v53, 0.0  ;;  %v268_v52 = vld [vmem:[%s2584_s13 + $0x130] sm:$0xff]  ;;  %v267_v53 = vld [vmem:[%s2584_s13 + $0x120] sm:$0xff] }
  0x90   : > { %593 = vadd.xlane.f32.xlu1 %v592_v60  ;;  %590 = vadd.xlane.f32.xlu0 %v589_v61  ;;  %v1897_v60 = vld [vmem:[%s2584_s13 + $0xd8] sm:$0xff]  ;;  %v1896_v61 = vld [vmem:[%s2584_s13 + $0xc8] sm:$0xff] }
  0x91   : > { %v450_v62 = vsel %vm314_vm0, %v1897_v60, 0.0  ;;  %v447_v63 = vsel %vm314_vm0, %v1896_v61, 0.0  ;;  %v679_v24 = vmul.f32 %v1896_v61, %v1896_v61  ;;  %v465_v61 = vsel %vm314_vm0, %v1902_v57, 0.0 }
  0x94   : > { %721 = vadd.xlane.f32.xlu1 %v720_v6  ;;  %718 = vadd.xlane.f32.xlu0 %v717_v7  ;;  %v360_v6 = vsel %vm314_vm0, %v264_v3, 0.0  ;;  %v357_v7 = vsel %vm314_vm0, %v263_v4, 0.0 }
  0x98   : > { %343 = vadd.xlane.f32.xlu1 %v342_v16  ;;  %340 = vadd.xlane.f32.xlu0 %v339_v17  ;;  %v453_v16 = vsel %vm314_vm0, %v1898_v11, 0.0  ;;  %v552_v17 = vmul.f32 %v262_v56, %v262_v56  ;;  %v1903_v56 = vld [vmem:[%s2584_s13 + $0x138] sm:$0xff]  ;;  %v683_v11 = vmul.f32 %v1900_v49, %v1900_v49 }
  0x9a   : > { %v610_v19 = vsel %vm314_vm0, %v552_v17, 0.0  ;;  %v750_v17 = vsel %vm314_vm0, %v684_v10, 0.0  ;;  %v272_v10 = vld [vmem:[%s2584_s13 + $0x170] sm:$0xff] }
  0x9c   : > { %439 = vadd.xlane.f32.xlu1 %v438_v22  ;;  %436 = vadd.xlane.f32.xlu0 %v435_v23  ;;  %v607_v22 = vsel %vm314_vm0, %v551_v18, 0.0  ;;  %v680_v23 = vmul.f32 %v1897_v60, %v1897_v60  ;;  %v468_v60 = vsel %vm314_vm0, %v1903_v56, 0.0  ;;  %v747_v18 = vsel %vm314_vm0, %v683_v11, 0.0  ;;  %v271_v11 = vld [vmem:[%s2584_s13 + $0x160] sm:$0xff] }
  0x9e   : > { %v738_v25 = vsel %vm314_vm0, %v680_v23, 0.0 }
  0xa0   : > { %349 = vadd.xlane.f32.xlu1 %v348_v26  ;;  %346 = vadd.xlane.f32.xlu0 %v345_v27  ;;  %v735_v26 = vsel %vm314_vm0, %v679_v24, 0.0  ;;  %v554_v27 = vmul.f32 %v264_v3, %v264_v3 }
  0xa4   : > { %445 = vadd.xlane.f32.xlu1 %v444_v30  ;;  %442 = vadd.xlane.f32.xlu0 %v441_v31  ;;  %v616_v30 = vsel %vm314_vm0, %v554_v27, 0.0  ;;  %v613_v31 = vsel %vm314_vm0, %v553_v29, 0.0  ;;  %v686_v27 = vmul.f32 %v1903_v56, %v1903_v56  ;;  %v685_v29 = vmul.f32 %v1902_v57, %v1902_v57 }
  0xa8   : > { %599 = vadd.xlane.f32.xlu1 %v598_v38  ;;  %596 = vadd.xlane.f32.xlu0 %v595_v39  ;;  %v744_v38 = vsel %vm314_vm0, %v682_v34, 0.0  ;;  %v741_v39 = vsel %vm314_vm0, %v681_v35, 0.0 }
  0xac   : > { %727 = vadd.xlane.f32.xlu1 %v726_v46  ;;  %724 = vadd.xlane.f32.xlu0 %v723_v47  ;;  %v366_v46 = vsel %vm314_vm0, %v266_v42, 0.0  ;;  %v363_v47 = vsel %vm314_vm0, %v265_v43, 0.0 }
  0xb0   : > { %605 = vadd.xlane.f32.xlu1 %v604_v50  ;;  %602 = vadd.xlane.f32.xlu0 %v601_v51  ;;  %v462_v50 = vsel %vm314_vm0, %v1901_v48, 0.0  ;;  %v459_v51 = vsel %vm314_vm0, %v1900_v49, 0.0 }
  0xb4   : > { %733 = vadd.xlane.f32.xlu1 %v732_v54  ;;  %730 = vadd.xlane.f32.xlu0 %v729_v55  ;;  %v372_v54 = vsel %vm314_vm0, %v268_v52, 0.0  ;;  %v369_v55 = vsel %vm314_vm0, %v267_v53, 0.0 }
  0xb8   : > { %355 = vadd.xlane.f32.xlu1 %v354_v58  ;;  %352 = vadd.xlane.f32.xlu0 %v351_v59 }
  0xbc   : > { %451 = vadd.xlane.f32.xlu1 %v450_v62  ;;  %448 = vadd.xlane.f32.xlu0 %v447_v63  ;;  %v556_v62 = vmul.f32 %v266_v42, %v266_v42  ;;  %v555_v63 = vmul.f32 %v265_v43, %v265_v43  ;;  %v270_v42 = vld [vmem:[%s2584_s13 + $0x150] sm:$0xff]  ;;  %v269_v43 = vld [vmem:[%s2584_s13 + $0x140] sm:$0xff] }
  0xc0   : > { %361 = vadd.xlane.f32.xlu1 %v360_v6  ;;  %358 = vadd.xlane.f32.xlu0 %v357_v7  ;;  %v622_v6 = vsel %vm314_vm0, %v556_v62, 0.0  ;;  %v619_v7 = vsel %vm314_vm0, %v555_v63, 0.0 }
  0xc4   : > { %457 = vadd.xlane.f32.xlu1 %v456_v15  ;;  %454 = vadd.xlane.f32.xlu0 %v453_v16 }
  0xc8   : > { %611 = vadd.xlane.f32.xlu1 %v610_v19  ;;  %608 = vadd.xlane.f32.xlu0 %v607_v22  ;;  %v558_v19 = vmul.f32 %v268_v52, %v268_v52  ;;  %v557_v22 = vmul.f32 %v267_v53, %v267_v53 }
  0xcc   : > { %739 = vadd.xlane.f32.xlu1 %v738_v25  ;;  %736 = vadd.xlane.f32.xlu0 %v735_v26  ;;  %v628_v25 = vsel %vm314_vm0, %v558_v19, 0.0  ;;  %v625_v26 = vsel %vm314_vm0, %v557_v22, 0.0  ;;  %v1907_v19 = vld [vmem:[%s2584_s13 + $0x178] sm:$0xff] }
  0xd0   : > { %617 = vadd.xlane.f32.xlu1 %v616_v30  ;;  %614 = vadd.xlane.f32.xlu0 %v613_v31 }
  0xd4   : > { %745 = vadd.xlane.f32.xlu1 %v744_v38  ;;  %742 = vadd.xlane.f32.xlu0 %v741_v39  ;;  %v756_v38 = vsel %vm314_vm0, %v686_v27, 0.0  ;;  %v753_v39 = vsel %vm314_vm0, %v685_v29, 0.0 }
  0xd8   : > { %367 = vadd.xlane.f32.xlu1 %v366_v46  ;;  %364 = vadd.xlane.f32.xlu0 %v363_v47 }
  0xdc   : > { %463 = vadd.xlane.f32.xlu1 %v462_v50  ;;  %460 = vadd.xlane.f32.xlu0 %v459_v51  ;;  %v378_v50 = vsel %vm314_vm0, %v270_v42, 0.0  ;;  %v375_v51 = vsel %vm314_vm0, %v269_v43, 0.0 }
  0xe0   : > { %373 = vadd.xlane.f32.xlu1 %v372_v54  ;;  %370 = vadd.xlane.f32.xlu0 %v369_v55  ;;  %v1905_v54 = vld [vmem:[%s2584_s13 + $0x158] sm:$0xff]  ;;  %v1904_v55 = vld [vmem:[%s2584_s13 + $0x148] sm:$0xff] }
  0xe1   : > { %v413_v58 = vpop.xlane.xlu1 %412  ;;  %v317_v59 = vpop.xlane.xlu0 %316 }
  0xe2   : > { %v507_v30 = vadd.f32 %v413_v58, %v317_v59 }
  0xe4   : > { %469 = vadd.xlane.f32.xlu1 %v468_v60  ;;  %466 = vadd.xlane.f32.xlu0 %v465_v61  ;;  %v2816_v46 = vmul.f32 0.0078125, %v507_v30 }
  0xe5   : > { %v416_v3 = vpop.xlane.xlu1 %415  ;;  %v320_v4 = vpop.xlane.xlu0 %319 }
  0xe6   : > { %v508_v31 = vadd.f32 %v416_v3, %v320_v4  ;;  %v891_v57 = vmul.f32 %v2816_v46, %v2816_v46  ;;  %v474_v3 = vsel %vm314_vm0, %v1905_v54, 0.0  ;;  %v471_v4 = vsel %vm314_vm0, %v1904_v55, 0.0 }
  0xe8   : > { %623 = vadd.xlane.f32.xlu1 %v622_v6  ;;  %620 = vadd.xlane.f32.xlu0 %v619_v7  ;;  %v2818_v47 = vmul.f32 0.0078125, %v508_v31  ;;  %v1906_v31 = vld [vmem:[%s2584_s13 + $0x168] sm:$0xff] }
  0xe9   : > { %v326_v15 = vpop.xlane.xlu1 %325  ;;  %v323_v16 = vpop.xlane.xlu0 %322 }
  0xea   : > { %v892_v60 = vmul.f32 %v2818_v47, %v2818_v47 }
  0xec   : > { %751 = vadd.xlane.f32.xlu1 %v750_v17  ;;  %748 = vadd.xlane.f32.xlu0 %v747_v18 }
  0xed   : > { %v422_v23 = vpop.xlane.xlu1 %421  ;;  %v419_v24 = vpop.xlane.xlu0 %418 }
  0xee   : > { %v510_v56 = vadd.f32 %v422_v23, %v326_v15  ;;  %v509_v58 = vadd.f32 %v419_v24, %v323_v16  ;;  %v384_v24 = vsel %vm314_vm0, %v272_v10, 0.0 }
  0xf0   : > { %629 = vadd.xlane.f32.xlu1 %v628_v25  ;;  %626 = vadd.xlane.f32.xlu0 %v625_v26  ;;  %v2832_v15 = vmul.f32 0.0078125, %v510_v56  ;;  %v2834_v16 = vmul.f32 0.0078125, %v509_v58  ;;  %v381_v25 = vsel %vm314_vm0, %v271_v11, 0.0 }
  0xf1   : > { %v576_v34 = vpop.xlane.xlu1 %575  ;;  %v573_v35 = vpop.xlane.xlu0 %572 }
  0xf4   : > { %757 = vadd.xlane.f32.xlu1 %v756_v38  ;;  %754 = vadd.xlane.f32.xlu0 %v753_v39  ;;  %v893_v39 = vmul.f32 %v2834_v16, %v2834_v16 }
  0xf5   : > { %v704_v48 = vpop.xlane.xlu1 %703  ;;  %v701_v49 = vpop.xlane.xlu0 %700 }
  0xf6   : > { %v796_v52 = vadd.f32 %v704_v48, %v576_v34  ;;  %v795_v53 = vadd.f32 %v701_v49, %v573_v35  ;;  %v894_v34 = vmul.f32 %v2832_v15, %v2832_v15  ;;  %v480_v35 = vsel %vm314_vm0, %v1907_v19, 0.0 }
  0xf8   : > { %v860_v59 = vmul.f32 0.0078125, %v796_v52  ;;  %v859_v61 = vmul.f32 0.0078125, %v795_v53  ;;  %379 = vadd.xlane.f32.xlu1 %v378_v50  ;;  %376 = vadd.xlane.f32.xlu0 %v375_v51  ;;  %v477_v51 = vsel %vm314_vm0, %v1906_v31, 0.0  ;;  %v560_v52 = vmul.f32 %v270_v42, %v270_v42 }
  0xf9   : > { %v582_v62 = vpop.xlane.xlu1 %581  ;;  %v579_v63 = vpop.xlane.xlu0 %578  ;;  %v559_v53 = vmul.f32 %v269_v43, %v269_v43  ;;  %v562_v42 = vmul.f32 %v272_v10, %v272_v10  ;;  %v561_v43 = vmul.f32 %v271_v11, %v271_v11  ;;  %v1052_v10 = vsub.f32 %v2608_v5, %v2818_v47 }
  0xfa   : > { %v924_v6 = vsub.f32 %v860_v59, %v892_v60  ;;  %v923_v7 = vsub.f32 %v859_v61, %v891_v57 }
  0xfc   : > { %v956_v17 = vmax.f32 %v924_v6, 0.0  ;;  %v955_v18 = vmax.f32 %v923_v7, 0.0  ;;  %475 = vadd.xlane.f32.xlu1 %v474_v3  ;;  %472 = vadd.xlane.f32.xlu0 %v471_v4  ;;  %v688_v3 = vmul.f32 %v1905_v54, %v1905_v54  ;;  %v687_v4 = vmul.f32 %v1904_v55, %v1904_v55 }
  0xfd   : > { %v710_v22 = vpop.xlane.xlu1 %709  ;;  %v707_v23 = vpop.xlane.xlu0 %706  ;;  %v637_v54 = vsel %vm314_vm0, %v561_v43, 0.0  ;;  %v1116_v55 = vsub.f32 %v2601_v2, %v2818_v47 }
  0xfe   : > { %v988_v26 = vadd.f32 1e-05, %v956_v17  ;;  %v987_v27 = vadd.f32 1e-05, %v955_v18  ;;  %v798_v29 = vadd.f32 %v710_v22, %v582_v62  ;;  %v797_v30 = vadd.f32 %v707_v23, %v579_v63 }
  0xff   : > { %v634_v62 = vsel %vm314_vm0, %v560_v52, 0.0  ;;  %v631_v63 = vsel %vm314_vm0, %v559_v53, 0.0  ;;  %v762_v22 = vsel %vm314_vm0, %v688_v3, 0.0  ;;  %v759_v23 = vsel %vm314_vm0, %v687_v4, 0.0 }
 0x100   : > { %2166 = vrsqrt.f32 %v988_v26  ;;  %v862_v38 = vmul.f32 0.0078125, %v798_v29  ;;  %v861_v48 = vmul.f32 0.0078125, %v797_v30  ;;  %385 = vadd.xlane.f32.xlu1 %v384_v24  ;;  %382 = vadd.xlane.f32.xlu0 %v381_v25  ;;  %v640_v24 = vsel %vm314_vm0, %v562_v42, 0.0  ;;  %v2890_v42 = vld [vmem:[%s2584_s13 + $0x188] sm:$0xff] }
 0x101   : > { %2168 = vrsqrt.f32 %v987_v27  ;;  %v332_v49 = vpop.xlane.xlu1 %331  ;;  %v329_v50 = vpop.xlane.xlu0 %328  ;;  %v1115_v27 = vsub.f32 %v2595_v0, %v2816_v46  ;;  %v1051_v29 = vsub.f32 %v2598_v1, %v2816_v46  ;;  %v690_v30 = vmul.f32 %v1907_v19, %v1907_v19  ;;  %v2863_v46 = vld [vmem:[%s2584_s13 + $0x190] sm:$0xff]  ;;  %v2866_v19 = vld [vmem:[%s2584_s13 + $0x180] sm:$0xff] }
 0x102   : > { %v926_v56 = vsub.f32 %v862_v38, %v894_v34  ;;  %v925_v57 = vsub.f32 %v861_v48, %v893_v39  ;;  %v689_v34 = vmul.f32 %v1906_v31, %v1906_v31 }
 0x104   : > { %v958_v58 = vmax.f32 %v926_v56, 0.0  ;;  %v957_v59 = vmax.f32 %v925_v57, 0.0  ;;  %481 = vadd.xlane.f32.xlu1 %v480_v35  ;;  %478 = vadd.xlane.f32.xlu0 %v477_v51  ;;  %v768_v56 = vsel %vm314_vm0, %v690_v30, 0.0  ;;  %v765_v1 = vsel %vm314_vm0, %v689_v34, 0.0  ;;  %v275_v30 = vld [vmem:[%s2584_s13 + $0x1a0] sm:$0xff] }
 0x105   : > { %v428_v60 = vpop.xlane.xlu1 %427  ;;  %v425_v61 = vpop.xlane.xlu0 %424 }
 0x106   : > { %v990_v6 = vadd.f32 1e-05, %v958_v58  ;;  %v989_v7 = vadd.f32 1e-05, %v957_v59  ;;  %v512_v2 = vadd.f32 %v428_v60, %v332_v49  ;;  %v511_v5 = vadd.f32 %v425_v61, %v329_v50 }
 0x107   : > { %v1054_v49 = vsub.f32 %v2615_v8, %v2832_v15  ;;  %v1118_v50 = vsub.f32 %v2625_v12, %v2832_v15  ;;  %v1053_v59 = vsub.f32 %v2618_v9, %v2834_v16  ;;  %v1117_v60 = vsub.f32 %v2628_v13, %v2834_v16 }
 0x108   : > { %2170 = vrsqrt.f32 %v990_v6  ;;  %635 = vadd.xlane.f32.xlu1 %v634_v62  ;;  %632 = vadd.xlane.f32.xlu0 %v631_v63  ;;  %v2868_v31 = vmul.f32 0.0078125, %v512_v2  ;;  %v2876_v57 = vmul.f32 0.0078125, %v511_v5  ;;  %v390_v8 = vsel %vm314_vm0, %v2863_v46, 0.0  ;;  %v1911_v2 = vld [vmem:[%s2584_s13 + $0x1b8] sm:$0xff] }
 0x109   : > { %2172 = vrsqrt.f32 %v989_v7  ;;  %v338_v17 = vpop.xlane.xlu1 %337  ;;  %v335_v18 = vpop.xlane.xlu0 %334  ;;  %v387_v12 = vsel %vm314_vm0, %v2866_v19, 0.0  ;;  %v2887_v7 = vld [vmem:[%s2584_s13 + $0x198] sm:$0xff] }
 0x10a   : > { %v896_v13 = vmul.f32 %v2868_v31, %v2868_v31 }
 0x10c   : > { %763 = vadd.xlane.f32.xlu1 %v762_v22  ;;  %760 = vadd.xlane.f32.xlu0 %v759_v23 }
 0x10d   : > { %v2167_v11 = vpop.eup %2166  ;;  %v434_v25 = vpop.xlane.xlu1 %433 }
 0x10e   : > { %v431_v26 = vpop.xlane.xlu0 %430  ;;  %v2169_v35 = vpop.eup %2168  ;;  %v1148_v38 = vmul.f32 %v2167_v11, %v1116_v55  ;;  %v1084_v39 = vmul.f32 %v2167_v11, %v1052_v10  ;;  %v514_v9 = vadd.f32 %v434_v25, %v338_v17  ;;  %v486_v25 = vsel %vm314_vm0, %v2887_v7, 0.0 }
 0x10f   : > { %v1147_v48 = vmul.f32 %v2169_v35, %v1115_v27  ;;  %v1083_v51 = vmul.f32 %v2169_v35, %v1051_v29  ;;  %v513_v22 = vadd.f32 %v431_v26, %v335_v18  ;;  %v483_v27 = vsel %vm314_vm0, %v2890_v42, 0.0  ;;  %v276_v26 = vld [vmem:[%s2584_s13 + $0x1b0] sm:$0xff] }
 0x110   : > { %641 = vadd.xlane.f32.xlu1 %v640_v24  ;;  %638 = vadd.xlane.f32.xlu0 %v637_v54  ;;  %v895_v24 = vmul.f32 %v2876_v57, %v2876_v57  ;;  %v2902_v34 = vmul.f32 0.0078125, %v514_v9  ;;  %v396_v5 = vsel %vm314_vm0, %v276_v26, 0.0 }
 0x111   : > { %v588_v47 = vpop.xlane.xlu1 %587  ;;  %v1203_v53 = vpack.c.bf16 %v1148_v38, %v1147_v48  ;;  %v1179_v0 = vpack.c.bf16 %v1084_v39, %v1083_v51  ;;  %v2906_v35 = vmul.f32 0.0078125, %v513_v22  ;;  %v692_v22 = vmul.f32 %v2887_v7, %v2887_v7 }
 0x112   : > { %v585_v52 = vpop.xlane.xlu0 %584  ;;  %v1056_v7 = vsub.f32 %v2659_v32, %v2868_v31 }
 0x113   : > { %2013 = vmatprep.mubr.msk.bf16.mxu0 %vm314_vm0, %v1203_v53  ;;  %2053 = vmatprep.mubr.msk.bf16.mxu1 %vm314_vm0, %v1179_v0 }
 0x114   : > { %769 = vadd.xlane.f32.xlu1 %v768_v56  ;;  %766 = vadd.xlane.f32.xlu0 %v765_v1  ;;  %v1910_v1 = vld [vmem:[%s2584_s13 + $0x1a8] sm:$0xff] }
 0x115   : > { %v2171_v58 = vpop.eup %2170  ;;  %v716_v61 = vpop.xlane.xlu1 %715  ;;  %v693_v32 = vmul.f32 %v1910_v1, %v1910_v1 }
 0x116   : > { %v713_v62 = vpop.xlane.xlu0 %712  ;;  %v2173_v15 = vpop.eup %2172  ;;  %v800_v63 = vadd.f32 %v716_v61, %v588_v47  ;;  %v1150_v4 = vmul.f32 %v2171_v58, %v1118_v50  ;;  %v1086_v6 = vmul.f32 %v2171_v58, %v1054_v49  ;;  %v393_v47 = vsel %vm314_vm0, %v275_v30, 0.0 }
 0x117   : > { %v799_v3 = vadd.f32 %v713_v62, %v585_v52  ;;  %v1149_v16 = vmul.f32 %v2173_v15, %v1117_v60  ;;  %v1085_v43 = vmul.f32 %v2173_v15, %v1053_v59  ;;  %v898_v49 = vmul.f32 %v2902_v34, %v2902_v34 }
 0x118   : > { %v864_v23 = vmul.f32 0.0078125, %v800_v63  ;;  %391 = vadd.xlane.f32.xlu1 %v390_v8  ;;  %388 = vadd.xlane.f32.xlu0 %v387_v12  ;;  %v492_v50 = vsel %vm314_vm0, %v1911_v2, 0.0  ;;  %v897_v59 = vmul.f32 %v2906_v35, %v2906_v35  ;;  %v489_v8 = vsel %vm314_vm0, %v1910_v1, 0.0  ;;  %v2946_v1 = vld [vmem:[%s2584_s13 + $0x1c0] sm:$0xff] }
 0x119   : > { %v863_v54 = vmul.f32 0.0078125, %v799_v3  ;;  %v594_v55 = vpop.xlane.xlu1 %593  ;;  %v1204_v11 = vpack.c.bf16 %v1150_v4, %v1149_v16  ;;  %v1180_v17 = vpack.c.bf16 %v1086_v6, %v1085_v43  ;;  %v564_v12 = vmul.f32 %v2863_v46, %v2863_v46 }
 0x11a   : > { %v591_v10 = vpop.xlane.xlu0 %590  ;;  %v928_v29 = vsub.f32 %v864_v23, %v896_v13  ;;  %v563_v15 = vmul.f32 %v2866_v19, %v2866_v19  ;;  %v691_v46 = vmul.f32 %v2890_v42, %v2890_v42  ;;  %v1120_v42 = vsub.f32 %v2669_v36, %v2868_v31 }
 0x11b   : > { %v927_v18 = vsub.f32 %v863_v54, %v895_v24  ;;  %2014 = vmatmul.mubr.msk.bf16.vlgmr.msra.gmra.mxu0 %vm314_vm0, %v1204_v11  ;;  %2054 = vmatmul.mubr.msk.bf16.vlgmr.msra.gmra.mxu1 %vm314_vm0, %v1180_v17  ;;  %v646_v16 = vsel %vm314_vm0, %v564_v12, 0.0  ;;  %v566_v24 = vmul.f32 %v276_v26, %v276_v26  ;;  %v565_v54 = vmul.f32 %v275_v30, %v275_v30 }
 0x11c   : > { %v960_v38 = vmax.f32 %v928_v29, 0.0  ;;  %487 = vadd.xlane.f32.xlu1 %v486_v25  ;;  %484 = vadd.xlane.f32.xlu0 %v483_v27  ;;  %v643_v43 = vsel %vm314_vm0, %v563_v15, 0.0  ;;  %v774_v11 = vsel %vm314_vm0, %v692_v22, 0.0  ;;  %v771_v17 = vsel %vm314_vm0, %v691_v46, 0.0 }
 0x11d   : > { %v959_v39 = vmax.f32 %v927_v18, 0.0  ;;  %v722_v48 = vpop.xlane.xlu1 %721  ;;  %v652_v25 = vsel %vm314_vm0, %v566_v24, 0.0  ;;  %v649_v27 = vsel %vm314_vm0, %v565_v54, 0.0  ;;  %v1055_v18 = vsub.f32 %v2662_v33, %v2876_v57 }
 0x11e   : > { %v719_v51 = vpop.xlane.xlu0 %718  ;;  %v992_v52 = vadd.f32 1e-05, %v960_v38  ;;  %v802_v0 = vadd.f32 %v722_v48, %v594_v55  ;;  %v1119_v26 = vsub.f32 %v2672_v37, %v2876_v57  ;;  %v777_v57 = vsel %vm314_vm0, %v693_v32, 0.0 }
 0x11f   : > { %v991_v53 = vadd.f32 1e-05, %v959_v39  ;;  %v801_v56 = vadd.f32 %v719_v51, %v591_v10  ;;  %v694_v39 = vmul.f32 %v1911_v2, %v1911_v2  ;;  %v2943_v2 = vld [vmem:[%s2584_s13 + $0x1d0] sm:$0xff] }
 0x120   : > { %2174 = vrsqrt.f32 %v992_v52  ;;  %v866_v58 = vmul.f32 0.0078125, %v802_v0  ;;  %397 = vadd.xlane.f32.xlu1 %v396_v5  ;;  %394 = vadd.xlane.f32.xlu0 %v393_v47 }
 0x121   : > { %v865_v60 = vmul.f32 0.0078125, %v801_v56  ;;  %2176 = vrsqrt.f32 %v991_v53  ;;  %v344_v61 = vpop.xlane.xlu1 %343  ;;  %v780_v37 = vsel %vm314_vm0, %v694_v39, 0.0 }
 0x122   : > { %v341_v62 = vpop.xlane.xlu0 %340  ;;  %v930_v63 = vsub.f32 %v866_v58, %v898_v49  ;;  %v1122_v58 = vsub.f32 %v2689_v44, %v2902_v34  ;;  %v399_v44 = vsel %vm314_vm0, %v2946_v1, 0.0 }
 0x123   : > { %v929_v3 = vsub.f32 %v865_v60, %v897_v59 }
 0x124   : > { %v962_v4 = vmax.f32 %v930_v63, 0.0  ;;  %493 = vadd.xlane.f32.xlu1 %v492_v50  ;;  %490 = vadd.xlane.f32.xlu0 %v489_v8  ;;  %v1058_v50 = vsub.f32 %v2679_v40, %v2902_v34  ;;  %v402_v40 = vsel %vm314_vm0, %v2943_v2, 0.0 }
 0x125   : > { %v961_v6 = vmax.f32 %v929_v3, 0.0  ;;  %v440_v9 = vpop.xlane.xlu1 %439 }
 0x126   : > { %v437_v13 = vpop.xlane.xlu0 %436  ;;  %v994_v23 = vadd.f32 1e-05, %v962_v4  ;;  %v516_v51 = vadd.f32 %v440_v9, %v344_v61  ;;  %v1057_v61 = vsub.f32 %v2682_v41, %v2906_v35  ;;  %v2970_v9 = vld [vmem:[%s2584_s13 + $0x1c8] sm:$0xff] }
 0x127   : > { %v993_v19 = vadd.f32 1e-05, %v961_v6  ;;  %v515_v52 = vadd.f32 %v437_v13, %v341_v62  ;;  %v1121_v62 = vsub.f32 %v2692_v45, %v2906_v35  ;;  %v2967_v6 = vld [vmem:[%s2584_s13 + $0x1d8] sm:$0xff] }
 0x128   : > { %2178 = vrsqrt.f32 %v994_v23  ;;  %647 = vadd.xlane.f32.xlu1 %v646_v16  ;;  %644 = vadd.xlane.f32.xlu0 %v643_v43  ;;  %v2948_v49 = vmul.f32 0.0078125, %v516_v51 }
 0x129   : > { %2180 = vrsqrt.f32 %v993_v19  ;;  %v350_v55 = vpop.xlane.xlu1 %349  ;;  %v2956_v59 = vmul.f32 0.0078125, %v515_v52 }
 0x12a   : > { %v347_v10 = vpop.xlane.xlu0 %346  ;;  %v900_v45 = vmul.f32 %v2948_v49, %v2948_v49 }
 0x12b   : > { %v899_v22 = vmul.f32 %v2956_v59, %v2956_v59 }
 0x12c   : > { %775 = vadd.xlane.f32.xlu1 %v774_v11  ;;  %772 = vadd.xlane.f32.xlu0 %v771_v17  ;;  %v495_v11 = vsel %vm314_vm0, %v2970_v9, 0.0 }
 0x12d   : > { %v2175_v29 = vpop.eup %2174  ;;  %v446_v30 = vpop.xlane.xlu1 %445 }
 0x12e   : > { %v443_v38 = vpop.xlane.xlu0 %442  ;;  %v2177_v48 = vpop.eup %2176  ;;  %v1152_v36 = vmul.f32 %v2175_v29, %v1120_v42  ;;  %v1088_v31 = vmul.f32 %v2175_v29, %v1056_v7  ;;  %v518_v41 = vadd.f32 %v446_v30, %v350_v55  ;;  %v498_v55 = vsel %vm314_vm0, %v2967_v6, 0.0  ;;  %v2981_v7 = vld [vmem:[%s2584_s13 + $0x1f0] sm:$0xff]  ;;  %v2984_v42 = vld [vmem:[%s2584_s13 + $0x1e0] sm:$0xff] }
 0x12f   : > { %v1151_v5 = vmul.f32 %v2177_v48, %v1119_v26  ;;  %v1087_v47 = vmul.f32 %v2177_v48, %v1055_v18  ;;  %v517_v16 = vadd.f32 %v443_v38, %v347_v10  ;;  %v2993_v26 = vld [vmem:[%s2584_s13 + $0x1f8] sm:$0xff]  ;;  %v408_v39 = vsel %vm314_vm0, %v2981_v7, 0.0 }
 0x130   : > { %653 = vadd.xlane.f32.xlu1 %v652_v25  ;;  %650 = vadd.xlane.f32.xlu0 %v649_v27  ;;  %v2986_v25 = vmul.f32 0.0078125, %v518_v41  ;;  %v405_v32 = vsel %vm314_vm0, %v2984_v42, 0.0  ;;  %v504_v52 = vsel %vm314_vm0, %v2993_v26, 0.0 }
 0x131   : > { %v600_v53 = vpop.xlane.xlu1 %599  ;;  %v1205_v0 = vpack.c.bf16 %v1152_v36, %v1151_v5  ;;  %v1181_v56 = vpack.c.bf16 %v1088_v31, %v1087_v47  ;;  %v2990_v27 = vmul.f32 0.0078125, %v517_v16  ;;  %v3000_v5 = vld [vmem:[%s2584_s13 + $0x1e8] sm:$0xff]  ;;  %v1060_v16 = vsub.f32 %v2723_v14, %v2948_v49 }
 0x132   : > { %v597_v33 = vpop.xlane.xlu0 %596  ;;  %v902_v47 = vmul.f32 %v2986_v25, %v2986_v25  ;;  %v698_v14 = vmul.f32 %v2993_v26, %v2993_v26 }
 0x133   : > { %2017 = vmatprep.mubr.msk.bf16.mxu0 %vm314_vm0, %v1205_v0  ;;  %2057 = vmatprep.mubr.msk.bf16.mxu1 %vm314_vm0, %v1181_v56 }
 0x134   : > { %781 = vadd.xlane.f32.xlu1 %v780_v37  ;;  %778 = vadd.xlane.f32.xlu0 %v777_v57  ;;  %v501_v57 = vsel %vm314_vm0, %v3000_v5, 0.0 }
 0x135   : > { %v2179_v60 = vpop.eup %2178  ;;  %v728_v8 = vpop.xlane.xlu1 %727 }
 0x136   : > { %v725_v12 = vpop.xlane.xlu0 %724  ;;  %v2181_v34 = vpop.eup %2180  ;;  %v804_v15 = vadd.f32 %v728_v8, %v600_v53  ;;  %v1154_v3 = vmul.f32 %v2179_v60, %v1122_v58  ;;  %v1090_v4 = vmul.f32 %v2179_v60, %v1058_v50  ;;  %v568_v50 = vmul.f32 %v2943_v2, %v2943_v2 }
 0x137   : > { %v803_v63 = vadd.f32 %v725_v12, %v597_v33  ;;  %v1153_v35 = vmul.f32 %v2181_v34, %v1121_v62  ;;  %v1089_v13 = vmul.f32 %v2181_v34, %v1057_v61  ;;  %v901_v33 = vmul.f32 %v2990_v27, %v2990_v27 }
 0x138   : > { %v868_v43 = vmul.f32 0.0078125, %v804_v15  ;;  %403 = vadd.xlane.f32.xlu1 %v402_v40  ;;  %400 = vadd.xlane.f32.xlu0 %v399_v44  ;;  %v567_v58 = vmul.f32 %v2946_v1, %v2946_v1  ;;  %v658_v44 = vsel %vm314_vm0, %v568_v50, 0.0  ;;  %v696_v15 = vmul.f32 %v2967_v6, %v2967_v6 }
 0x139   : > { %v867_v46 = vmul.f32 0.0078125, %v803_v63  ;;  %v606_v23 = vpop.xlane.xlu1 %605  ;;  %v1206_v24 = vpack.c.bf16 %v1154_v3, %v1153_v35  ;;  %v1182_v54 = vpack.c.bf16 %v1090_v4, %v1089_v13  ;;  %v695_v2 = vmul.f32 %v2970_v9, %v2970_v9 }
 0x13a   : > { %v603_v19 = vpop.xlane.xlu0 %602  ;;  %v932_v17 = vsub.f32 %v868_v43, %v900_v45  ;;  %v655_v34 = vsel %vm314_vm0, %v567_v58, 0.0  ;;  %v570_v3 = vmul.f32 %v2981_v7, %v2981_v7  ;;  %v569_v4 = vmul.f32 %v2984_v42, %v2984_v42 }
 0x13b   : > { %v931_v10 = vsub.f32 %v867_v46, %v899_v22  ;;  %2018 = vmatmul.mubr.msk.bf16.gmra.mxu0 %vm314_vm0, %v1206_v24  ;;  %2058 = vmatmul.mubr.msk.bf16.gmra.mxu1 %vm314_vm0, %v1182_v54  ;;  %v786_v35 = vsel %vm314_vm0, %v696_v15, 0.0  ;;  %v783_v13 = vsel %vm314_vm0, %v695_v2, 0.0  ;;  %v1124_v43 = vsub.f32 %v2730_v20, %v2948_v49 }
 0x13c   : > { %v964_v29 = vmax.f32 %v932_v17, 0.0  ;;  %499 = vadd.xlane.f32.xlu1 %v498_v55  ;;  %496 = vadd.xlane.f32.xlu0 %v495_v11  ;;  %v664_v22 = vsel %vm314_vm0, %v570_v3, 0.0  ;;  %v661_v46 = vsel %vm314_vm0, %v569_v4, 0.0  ;;  %v1123_v54 = vsub.f32 %v2733_v21, %v2956_v59 }
 0x13d   : > { %v963_v18 = vmax.f32 %v931_v10, 0.0  ;;  %v734_v30 = vpop.xlane.xlu1 %733  ;;  %v697_v20 = vmul.f32 %v3000_v5, %v3000_v5 }
 0x13e   : > { %v731_v38 = vpop.xlane.xlu0 %730  ;;  %v996_v48 = vadd.f32 1e-05, %v964_v29  ;;  %v806_v31 = vadd.f32 %v734_v30, %v606_v23 }
 0x13f   : > { %v995_v36 = vadd.f32 1e-05, %v963_v18  ;;  %v805_v51 = vadd.f32 %v731_v38, %v603_v19  ;;  %v2230_v19 = vld [vmem:[%s2584_s13 + $0x80] sm:$0xff] }
 0x140   : > { %2182 = vrsqrt.f32 %v996_v48  ;;  %v870_v53 = vmul.f32 0.0078125, %v806_v31  ;;  %409 = vadd.xlane.f32.xlu1 %v408_v39  ;;  %406 = vadd.xlane.f32.xlu0 %v405_v32  ;;  %v1059_v24 = vsub.f32 %v2230_v19, %v2956_v59  ;;  %v792_v48 = vsel %vm314_vm0, %v698_v14, 0.0 }
 0x141   : > { %v869_v0 = vmul.f32 0.0078125, %v805_v51  ;;  %2184 = vrsqrt.f32 %v995_v36  ;;  %v356_v56 = vpop.xlane.xlu1 %355  ;;  %v789_v36 = vsel %vm314_vm0, %v697_v20, 0.0  ;;  %v2231_v51 = vld [vmem:[%s2584_s13 + $0xb0] sm:$0xff] }
 0x142   : > { %v353_v37 = vpop.xlane.xlu0 %352  ;;  %v934_v60 = vsub.f32 %v870_v53, %v902_v47  ;;  %v1062_v47 = vsub.f32 %v2231_v51, %v2986_v25 }
 0x143   : > { %v933_v61 = vsub.f32 %v869_v0, %v901_v33  ;;  %v2232_v0 = vld [vmem:[%s2584_s13 + $0xa0] sm:$0xff] }
 0x144   : > { %v966_v62 = vmax.f32 %v934_v60, 0.0  ;;  %505 = vadd.xlane.f32.xlu1 %v504_v52  ;;  %502 = vadd.xlane.f32.xlu0 %v501_v57  ;;  %v1126_v52 = vsub.f32 %v2744_v28, %v2986_v25 }
 0x145   : > { %v965_v8 = vmax.f32 %v933_v61, 0.0  ;;  %v452_v12 = vpop.xlane.xlu1 %451 }
 0x146   : > { %v449_v40 = vpop.xlane.xlu0 %448  ;;  %v998_v63 = vadd.f32 1e-05, %v966_v62  ;;  %v520_v29 = vadd.f32 %v452_v12, %v356_v56  ;;  %v1061_v56 = vsub.f32 %v2232_v0, %v2990_v27  ;;  %v2236_v0 = vld [vmem:[%s2584_s13 + $0xc0] sm:$0xff] }
 0x147   : > { %v997_v1 = vadd.f32 1e-05, %v965_v8  ;;  %v519_v38 = vadd.f32 %v449_v40, %v353_v37  ;;  %v2233_v37 = vld [vmem:[%s2584_s13 + $0xa8] sm:$0xff] }
 0x148   : > { %2186 = vrsqrt.f32 %v998_v63  ;;  %659 = vadd.xlane.f32.xlu1 %v658_v44  ;;  %656 = vadd.xlane.f32.xlu0 %v655_v34  ;;  %v3042_v31 = vmul.f32 0.0078125, %v520_v29  ;;  %v1125_v57 = vsub.f32 %v2233_v37, %v2990_v27  ;;  %v2237_v37 = vld [vmem:[%s2584_s13 + $0xc8] sm:$0xff] }
 0x149   : > { %2188 = vrsqrt.f32 %v997_v1  ;;  %v362_v41 = vpop.xlane.xlu1 %361  ;;  %v3050_v53 = vmul.f32 0.0078125, %v519_v38 }
 0x14a   : > { %v359_v45 = vpop.xlane.xlu0 %358  ;;  %v904_v28 = vmul.f32 %v3042_v31, %v3042_v31 }
 0x14b   : > { %v903_v2 = vmul.f32 %v3050_v53, %v3050_v53 }
 0x14c   : > { %787 = vadd.xlane.f32.xlu1 %v786_v35  ;;  %784 = vadd.xlane.f32.xlu0 %v783_v13 }
 0x14d   : > { %v2183_v23 = vpop.eup %2182  ;;  %v458_v55 = vpop.xlane.xlu1 %457 }
 0x14e   : > { %v455_v11 = vpop.xlane.xlu0 %454  ;;  %v2185_v49 = vpop.eup %2184  ;;  %v1156_v17 = vmul.f32 %v2183_v23, %v1124_v43  ;;  %v1092_v10 = vmul.f32 %v2183_v23, %v1060_v16  ;;  %v522_v40 = vadd.f32 %v458_v55, %v362_v41 }
 0x14f   : > { %v1155_v18 = vmul.f32 %v2185_v49, %v1123_v54  ;;  %v1091_v30 = vmul.f32 %v2185_v49, %v1059_v24  ;;  %v521_v34 = vadd.f32 %v455_v11, %v359_v45 }
 0x150   : > { %665 = vadd.xlane.f32.xlu1 %v664_v22  ;;  %662 = vadd.xlane.f32.xlu0 %v661_v46  ;;  %v3060_v16 = vmul.f32 0.0078125, %v522_v40 }
 0x151   : > { %v612_v39 = vpop.xlane.xlu1 %611  ;;  %v1207_v59 = vpack.c.bf16 %v1156_v17, %v1155_v18  ;;  %v1183_v32 = vpack.c.bf16 %v1092_v10, %v1091_v30  ;;  %v3064_v41 = vmul.f32 0.0078125, %v521_v34 }
 0x152   : > { %v609_v21 = vpop.xlane.xlu0 %608  ;;  %v906_v55 = vmul.f32 %v3060_v16, %v3060_v16 }
 0x153   : > { %2021 = vmatprep.mubr.msk.bf16.mxu0 %vm314_vm0, %v1207_v59  ;;  %2061 = vmatprep.mubr.msk.bf16.mxu1 %vm314_vm0, %v1183_v32  ;;  %v905_v14 = vmul.f32 %v3064_v41, %v3064_v41 }
 0x154   : > { %793 = vadd.xlane.f32.xlu1 %v792_v48  ;;  %790 = vadd.xlane.f32.xlu0 %v789_v36  ;;  %v2234_v36 = vld [vmem:[%s2584_s13 + $0xd0] sm:$0xff] }
 0x155   : > { %v2187_v33 = vpop.eup %2186  ;;  %v740_v50 = vpop.xlane.xlu1 %739  ;;  %v1064_v51 = vsub.f32 %v2234_v36, %v3042_v31 }
 0x156   : > { %v737_v58 = vpop.xlane.xlu0 %736  ;;  %v2189_v60 = vpop.eup %2188  ;;  %v808_v61 = vadd.f32 %v740_v50, %v612_v39  ;;  %v1158_v8 = vmul.f32 %v2187_v33, %v1126_v52  ;;  %v1094_v12 = vmul.f32 %v2187_v33, %v1062_v47  ;;  %v2235_v47 = vld [vmem:[%s2584_s13 + $0xd8] sm:$0xff] }
 0x157   : > { %v807_v62 = vadd.f32 %v737_v58, %v609_v21  ;;  %v1157_v25 = vmul.f32 %v2189_v60, %v1125_v57  ;;  %v1093_v44 = vmul.f32 %v2189_v60, %v1061_v56  ;;  %v1128_v52 = vsub.f32 %v2235_v47, %v3042_v31 }
 0x158   : > { %v872_v15 = vmul.f32 0.0078125, %v808_v61  ;;  %v1063_v56 = vsub.f32 %v2236_v0, %v3050_v53  ;;  %v1127_v57 = vsub.f32 %v2237_v37, %v3050_v53  ;;  %v2238_v53 = vld [vmem:[%s2584_s13 + $0xf0] sm:$0xff] }
 0x159   : > { %v871_v63 = vmul.f32 0.0078125, %v807_v62  ;;  %v618_v27 = vpop.xlane.xlu1 %617  ;;  %v1208_v3 = vpack.c.bf16 %v1158_v8, %v1157_v25  ;;  %v1184_v4 = vpack.c.bf16 %v1094_v12, %v1093_v44 }
 0x15a   : > { %v615_v1 = vpop.xlane.xlu0 %614  ;;  %v936_v35 = vsub.f32 %v872_v15, %v904_v28 }
 0x15b   : > { %v935_v13 = vsub.f32 %v871_v63, %v903_v2  ;;  %2022 = vmatmul.mubr.msk.bf16.gmra.mxu0 %vm314_vm0, %v1208_v3  ;;  %2062 = vmatmul.mubr.msk.bf16.gmra.mxu1 %vm314_vm0, %v1184_v4  ;;  %v1066_v2 = vsub.f32 %v2238_v53, %v3060_v16  ;;  %v2239_v63 = vld [vmem:[%s2584_s13 + $0xf8] sm:$0xff]  ;;  %v2240_v4 = vld [vmem:[%s2584_s13 + $0xe0] sm:$0xff]  ;;  %v2242_v53 = vld [vmem:[%s2584_s13 + $0x110] sm:$0xff] }
 0x15c   : > { %v968_v45 = vmax.f32 %v936_v35, 0.0  ;;  %v1065_v35 = vsub.f32 %v2240_v4, %v3064_v41  ;;  %v2244_v4 = vld [vmem:[%s2584_s13 + $0x100] sm:$0xff] }
 0x15d   : > { %v967_v43 = vmax.f32 %v935_v13, 0.0  ;;  %v746_v22 = vpop.xlane.xlu1 %745  ;;  %v2241_v13 = vld [vmem:[%s2584_s13 + $0xe8] sm:$0xff] }
 0x15e   : > { %v743_v46 = vpop.xlane.xlu0 %742  ;;  %v1000_v23 = vadd.f32 1e-05, %v968_v45  ;;  %v810_v24 = vadd.f32 %v746_v22, %v618_v27  ;;  %v1130_v27 = vsub.f32 %v2239_v63, %v3060_v16  ;;  %v1129_v45 = vsub.f32 %v2241_v13, %v3064_v41  ;;  %v2243_v63 = vld [vmem:[%s2584_s13 + $0x118] sm:$0xff]  ;;  %v2245_v13 = vld [vmem:[%s2584_s13 + $0x108] sm:$0xff] }
 0x15f   : > { %v999_v19 = vadd.f32 1e-05, %v967_v43  ;;  %v809_v54 = vadd.f32 %v743_v46, %v615_v1 }
 0x160   : > { %2190 = vrsqrt.f32 %v1000_v23  ;;  %v874_v11 = vmul.f32 0.0078125, %v810_v24 }
 0x161   : > { %v873_v20 = vmul.f32 0.0078125, %v809_v54  ;;  %2192 = vrsqrt.f32 %v999_v19  ;;  %v368_v49 = vpop.xlane.xlu1 %367 }
 0x162   : > { %v365_v17 = vpop.xlane.xlu0 %364  ;;  %v938_v10 = vsub.f32 %v874_v11, %v906_v55 }
 0x163   : > { %v937_v29 = vsub.f32 %v873_v20, %v905_v14 }
 0x164   : > { %v970_v18 = vmax.f32 %v938_v10, 0.0 }
 0x165   : > { %v969_v30 = vmax.f32 %v937_v29, 0.0  ;;  %v464_v38 = vpop.xlane.xlu1 %463 }
 0x166   : > { %v461_v39 = vpop.xlane.xlu0 %460  ;;  %v1002_v21 = vadd.f32 1e-05, %v970_v18  ;;  %v524_v8 = vadd.f32 %v464_v38, %v368_v49 }
 0x167   : > { %v1001_v59 = vadd.f32 1e-05, %v969_v30  ;;  %v523_v28 = vadd.f32 %v461_v39, %v365_v17 }
 0x168   : > { %2194 = vrsqrt.f32 %v1002_v21  ;;  %v3078_v15 = vmul.f32 0.0078125, %v524_v8 }
 0x169   : > { %2196 = vrsqrt.f32 %v1001_v59  ;;  %v374_v32 = vpop.xlane.xlu1 %373  ;;  %v3086_v1 = vmul.f32 0.0078125, %v523_v28 }
 0x16a   : > { %v371_v48 = vpop.xlane.xlu0 %370  ;;  %v908_v16 = vmul.f32 %v3078_v15, %v3078_v15 }
 0x16b   : > { %v907_v17 = vmul.f32 %v3086_v1, %v3086_v1 }
 0x16d   : > { %v2191_v33 = vpop.eup %2190  ;;  %v470_v50 = vpop.xlane.xlu1 %469 }
 0x16e   : > { %v467_v58 = vpop.xlane.xlu0 %466  ;;  %v2193_v60 = vpop.eup %2192  ;;  %v1160_v61 = vmul.f32 %v2191_v33, %v1128_v52  ;;  %v1096_v62 = vmul.f32 %v2191_v33, %v1064_v51  ;;  %v526_v55 = vadd.f32 %v470_v50, %v374_v32 }
 0x16f   : > { %v1159_v12 = vmul.f32 %v2193_v60, %v1127_v57  ;;  %v1095_v40 = vmul.f32 %v2193_v60, %v1063_v56  ;;  %v525_v20 = vadd.f32 %v467_v58, %v371_v48 }
 0x170   : > { %v3096_v21 = vmul.f32 0.0078125, %v526_v55 }
 0x171   : > { %v624_v31 = vpop.xlane.xlu1 %623  ;;  %v1209_v44 = vpack.c.bf16 %v1160_v61, %v1159_v12  ;;  %v1185_v34 = vpack.c.bf16 %v1096_v62, %v1095_v40  ;;  %v3100_v59 = vmul.f32 0.0078125, %v525_v20 }
 0x172   : > { %v621_v25 = vpop.xlane.xlu0 %620  ;;  %v910_v56 = vmul.f32 %v3096_v21, %v3096_v21 }
 0x173   : > { %2025 = vmatprep.mubr.msk.bf16.mxu0 %vm314_vm0, %v1209_v44  ;;  %2065 = vmatprep.mubr.msk.bf16.mxu1 %vm314_vm0, %v1185_v34  ;;  %v909_v57 = vmul.f32 %v3100_v59, %v3100_v59 }
 0x175   : > { %v2195_v3 = vpop.eup %2194  ;;  %v752_v43 = vpop.xlane.xlu1 %751 }
 0x176   : > { %v749_v22 = vpop.xlane.xlu0 %748  ;;  %v2197_v46 = vpop.eup %2196  ;;  %v812_v23 = vadd.f32 %v752_v43, %v624_v31  ;;  %v1162_v24 = vmul.f32 %v2195_v3, %v1130_v27  ;;  %v1098_v54 = vmul.f32 %v2195_v3, %v1066_v2  ;;  %v1068_v2 = vsub.f32 %v2242_v53, %v3078_v15 }
 0x177   : > { %v811_v19 = vadd.f32 %v749_v22, %v621_v25  ;;  %v1161_v11 = vmul.f32 %v2197_v46, %v1129_v45  ;;  %v1097_v14 = vmul.f32 %v2197_v46, %v1065_v35  ;;  %v1132_v27 = vsub.f32 %v2243_v63, %v3078_v15 }
 0x178   : > { %v876_v49 = vmul.f32 0.0078125, %v812_v23  ;;  %v1067_v35 = vsub.f32 %v2244_v4, %v3086_v1  ;;  %v1131_v45 = vsub.f32 %v2245_v13, %v3086_v1  ;;  %v2246_v1 = vld [vmem:[%s2584_s13 + $0x130] sm:$0xff] }
 0x179   : > { %v875_v10 = vmul.f32 0.0078125, %v811_v19  ;;  %v630_v41 = vpop.xlane.xlu1 %629  ;;  %v1210_v18 = vpack.c.bf16 %v1162_v24, %v1161_v11  ;;  %v1186_v30 = vpack.c.bf16 %v1098_v54, %v1097_v14 }
 0x17a   : > { %v627_v29 = vpop.xlane.xlu0 %626  ;;  %v940_v38 = vsub.f32 %v876_v49, %v908_v16 }
 0x17b   : > { %v939_v39 = vsub.f32 %v875_v10, %v907_v17  ;;  %2026 = vmatmul.mubr.msk.bf16.gmra.mxu0 %vm314_vm0, %v1210_v18  ;;  %2066 = vmatmul.mubr.msk.bf16.gmra.mxu1 %vm314_vm0, %v1186_v30  ;;  %v1070_v17 = vsub.f32 %v2246_v1, %v3096_v21  ;;  %v2247_v10 = vld [vmem:[%s2584_s13 + $0x138] sm:$0xff]  ;;  %v2248_v30 = vld [vmem:[%s2584_s13 + $0x120] sm:$0xff]  ;;  %v2250_v1 = vld [vmem:[%s2584_s13 + $0x150] sm:$0xff] }
 0x17c   : > { %v972_v32 = vmax.f32 %v940_v38, 0.0  ;;  %v1069_v38 = vsub.f32 %v2248_v30, %v3100_v59  ;;  %v2252_v30 = vld [vmem:[%s2584_s13 + $0x140] sm:$0xff] }
 0x17d   : > { %v971_v48 = vmax.f32 %v939_v39, 0.0  ;;  %v758_v36 = vpop.xlane.xlu1 %757  ;;  %v2249_v39 = vld [vmem:[%s2584_s13 + $0x128] sm:$0xff] }
 0x17e   : > { %v755_v51 = vpop.xlane.xlu0 %754  ;;  %v1004_v47 = vadd.f32 1e-05, %v972_v32  ;;  %v814_v33 = vadd.f32 %v758_v36, %v630_v41  ;;  %v1134_v41 = vsub.f32 %v2247_v10, %v3096_v21  ;;  %v1133_v32 = vsub.f32 %v2249_v39, %v3100_v59  ;;  %v2251_v10 = vld [vmem:[%s2584_s13 + $0x158] sm:$0xff]  ;;  %v2253_v39 = vld [vmem:[%s2584_s13 + $0x148] sm:$0xff] }
 0x17f   : > { %v1003_v52 = vadd.f32 1e-05, %v971_v48  ;;  %v813_v0 = vadd.f32 %v755_v51, %v627_v29 }
 0x180   : > { %2198 = vrsqrt.f32 %v1004_v47  ;;  %v878_v37 = vmul.f32 0.0078125, %v814_v33 }
 0x181   : > { %v877_v50 = vmul.f32 0.0078125, %v813_v0  ;;  %2200 = vrsqrt.f32 %v1003_v52  ;;  %v380_v58 = vpop.xlane.xlu1 %379 }
 0x182   : > { %v377_v60 = vpop.xlane.xlu0 %376  ;;  %v942_v61 = vsub.f32 %v878_v37, %v910_v56 }
 0x183   : > { %v941_v62 = vsub.f32 %v877_v50, %v909_v57 }
 0x184   : > { %v974_v8 = vmax.f32 %v942_v61, 0.0 }
 0x185   : > { %v973_v12 = vmax.f32 %v941_v62, 0.0  ;;  %v476_v40 = vpop.xlane.xlu1 %475 }
 0x186   : > { %v473_v28 = vpop.xlane.xlu0 %472  ;;  %v1006_v31 = vadd.f32 1e-05, %v974_v8  ;;  %v528_v24 = vadd.f32 %v476_v40, %v380_v58 }
 0x187   : > { %v1005_v25 = vadd.f32 1e-05, %v973_v12  ;;  %v527_v16 = vadd.f32 %v473_v28, %v377_v60 }
 0x188   : > { %2202 = vrsqrt.f32 %v1006_v31  ;;  %v3114_v49 = vmul.f32 0.0078125, %v528_v24 }
 0x189   : > { %2204 = vrsqrt.f32 %v1005_v25  ;;  %v386_v44 = vpop.xlane.xlu1 %385  ;;  %v3122_v29 = vmul.f32 0.0078125, %v527_v16 }
 0x18a   : > { %v383_v34 = vpop.xlane.xlu0 %382  ;;  %v912_v21 = vmul.f32 %v3114_v49, %v3114_v49 }
 0x18b   : > { %v911_v60 = vmul.f32 %v3122_v29, %v3122_v29 }
 0x18d   : > { %v2199_v3 = vpop.eup %2198  ;;  %v482_v43 = vpop.xlane.xlu1 %481 }
 0x18e   : > { %v479_v22 = vpop.xlane.xlu0 %478  ;;  %v2201_v46 = vpop.eup %2200  ;;  %v1164_v23 = vmul.f32 %v2199_v3, %v1132_v27  ;;  %v1100_v19 = vmul.f32 %v2199_v3, %v1068_v2  ;;  %v530_v56 = vadd.f32 %v482_v43, %v386_v44 }
 0x18f   : > { %v1163_v54 = vmul.f32 %v2201_v46, %v1131_v45  ;;  %v1099_v55 = vmul.f32 %v2201_v46, %v1067_v35  ;;  %v529_v50 = vadd.f32 %v479_v22, %v383_v34 }
 0x190   : > { %v3132_v31 = vmul.f32 0.0078125, %v530_v56 }
 0x191   : > { %v636_v15 = vpop.xlane.xlu1 %635  ;;  %v1211_v14 = vpack.c.bf16 %v1164_v23, %v1163_v54  ;;  %v1187_v20 = vpack.c.bf16 %v1100_v19, %v1099_v55  ;;  %v3136_v25 = vmul.f32 0.0078125, %v529_v50 }
 0x192   : > { %v633_v11 = vpop.xlane.xlu0 %632  ;;  %v914_v35 = vmul.f32 %v3132_v31, %v3132_v31 }
 0x193   : > { %2029 = vmatprep.mubr.msk.bf16.mxu0 %vm314_vm0, %v1211_v14  ;;  %2069 = vmatprep.mubr.msk.bf16.mxu1 %vm314_vm0, %v1187_v20  ;;  %v913_v45 = vmul.f32 %v3136_v25, %v3136_v25 }
 0x195   : > { %v2203_v18 = vpop.eup %2202  ;;  %v764_v48 = vpop.xlane.xlu1 %763 }
 0x196   : > { %v761_v36 = vpop.xlane.xlu0 %760  ;;  %v2205_v51 = vpop.eup %2204  ;;  %v816_v47 = vadd.f32 %v764_v48, %v636_v15  ;;  %v1166_v33 = vmul.f32 %v2203_v18, %v1134_v41  ;;  %v1102_v0 = vmul.f32 %v2203_v18, %v1070_v17  ;;  %v1072_v17 = vsub.f32 %v2250_v1, %v3114_v49 }
 0x197   : > { %v815_v52 = vadd.f32 %v761_v36, %v633_v11  ;;  %v1165_v37 = vmul.f32 %v2205_v51, %v1133_v32  ;;  %v1101_v57 = vmul.f32 %v2205_v51, %v1069_v38  ;;  %v1136_v41 = vsub.f32 %v2251_v10, %v3114_v49 }
 0x198   : > { %v880_v58 = vmul.f32 0.0078125, %v816_v47  ;;  %v1071_v38 = vsub.f32 %v2252_v30, %v3122_v29  ;;  %v1135_v32 = vsub.f32 %v2253_v39, %v3122_v29  ;;  %v2254_v29 = vld [vmem:[%s2584_s13 + $0x170] sm:$0xff] }
 0x199   : > { %v879_v61 = vmul.f32 0.0078125, %v815_v52  ;;  %v642_v59 = vpop.xlane.xlu1 %641  ;;  %v1212_v8 = vpack.c.bf16 %v1166_v33, %v1165_v37  ;;  %v1188_v12 = vpack.c.bf16 %v1102_v0, %v1101_v57 }
 0x19a   : > { %v639_v62 = vpop.xlane.xlu0 %638  ;;  %v944_v40 = vsub.f32 %v880_v58, %v912_v21 }
 0x19b   : > { %v943_v28 = vsub.f32 %v879_v61, %v911_v60  ;;  %2030 = vmatmul.mubr.msk.bf16.gmra.mxu0 %vm314_vm0, %v1212_v8  ;;  %2070 = vmatmul.mubr.msk.bf16.gmra.mxu1 %vm314_vm0, %v1188_v12  ;;  %v1074_v60 = vsub.f32 %v2254_v29, %v3132_v31  ;;  %v2255_v61 = vld [vmem:[%s2584_s13 + $0x178] sm:$0xff]  ;;  %v2256_v12 = vld [vmem:[%s2584_s13 + $0x160] sm:$0xff]  ;;  %v2258_v29 = vld [vmem:[%s2584_s13 + $0x190] sm:$0xff] }
 0x19c   : > { %v976_v44 = vmax.f32 %v944_v40, 0.0  ;;  %v1073_v40 = vsub.f32 %v2256_v12, %v3136_v25  ;;  %v2260_v12 = vld [vmem:[%s2584_s13 + $0x180] sm:$0xff] }
 0x19d   : > { %v975_v34 = vmax.f32 %v943_v28, 0.0  ;;  %v770_v53 = vpop.xlane.xlu1 %769  ;;  %v2257_v28 = vld [vmem:[%s2584_s13 + $0x168] sm:$0xff] }
 0x19e   : > { %v767_v2 = vpop.xlane.xlu0 %766  ;;  %v1008_v63 = vadd.f32 1e-05, %v976_v44  ;;  %v818_v3 = vadd.f32 %v770_v53, %v642_v59  ;;  %v1138_v59 = vsub.f32 %v2255_v61, %v3132_v31  ;;  %v1137_v44 = vsub.f32 %v2257_v28, %v3136_v25  ;;  %v2259_v61 = vld [vmem:[%s2584_s13 + $0x198] sm:$0xff]  ;;  %v2261_v28 = vld [vmem:[%s2584_s13 + $0x188] sm:$0xff] }
 0x19f   : > { %v1007_v27 = vadd.f32 1e-05, %v975_v34  ;;  %v817_v4 = vadd.f32 %v767_v2, %v639_v62 }
 0x1a0   : > { %2206 = vrsqrt.f32 %v1008_v63  ;;  %v882_v13 = vmul.f32 0.0078125, %v818_v3 }
 0x1a1   : > { %v881_v43 = vmul.f32 0.0078125, %v817_v4  ;;  %2208 = vrsqrt.f32 %v1007_v27  ;;  %v392_v22 = vpop.xlane.xlu1 %391 }
 0x1a2   : > { %v389_v46 = vpop.xlane.xlu0 %388  ;;  %v946_v23 = vsub.f32 %v882_v13, %v914_v35 }
 0x1a3   : > { %v945_v19 = vsub.f32 %v881_v43, %v913_v45 }
 0x1a4   : > { %v978_v24 = vmax.f32 %v946_v23, 0.0 }
 0x1a5   : > { %v977_v54 = vmax.f32 %v945_v19, 0.0  ;;  %v488_v55 = vpop.xlane.xlu1 %487 }
 0x1a6   : > { %v485_v16 = vpop.xlane.xlu0 %484  ;;  %v1010_v15 = vadd.f32 1e-05, %v978_v24  ;;  %v532_v33 = vadd.f32 %v488_v55, %v392_v22 }
 0x1a7   : > { %v1009_v11 = vadd.f32 1e-05, %v977_v54  ;;  %v531_v21 = vadd.f32 %v485_v16, %v389_v46 }
 0x1a8   : > { %2210 = vrsqrt.f32 %v1010_v15  ;;  %v3150_v58 = vmul.f32 0.0078125, %v532_v33 }
 0x1a9   : > { %2212 = vrsqrt.f32 %v1009_v11  ;;  %v398_v14 = vpop.xlane.xlu1 %397  ;;  %v3158_v62 = vmul.f32 0.0078125, %v531_v21 }
 0x1aa   : > { %v395_v20 = vpop.xlane.xlu0 %394  ;;  %v916_v31 = vmul.f32 %v3150_v58, %v3150_v58 }
 0x1ab   : > { %v915_v46 = vmul.f32 %v3158_v62, %v3158_v62 }
 0x1ad   : > { %v2207_v18 = vpop.eup %2206  ;;  %v494_v48 = vpop.xlane.xlu1 %493 }
 0x1ae   : > { %v491_v36 = vpop.xlane.xlu0 %490  ;;  %v2209_v51 = vpop.eup %2208  ;;  %v1168_v47 = vmul.f32 %v2207_v18, %v1136_v41  ;;  %v1104_v52 = vmul.f32 %v2207_v18, %v1072_v17  ;;  %v534_v35 = vadd.f32 %v494_v48, %v398_v14 }
 0x1af   : > { %v1167_v0 = vmul.f32 %v2209_v51, %v1135_v32  ;;  %v1103_v56 = vmul.f32 %v2209_v51, %v1071_v38  ;;  %v533_v43 = vadd.f32 %v491_v36, %v395_v20 }
 0x1b0   : > { %v3168_v15 = vmul.f32 0.0078125, %v534_v35 }
 0x1b1   : > { %v648_v49 = vpop.xlane.xlu1 %647  ;;  %v1213_v57 = vpack.c.bf16 %v1168_v47, %v1167_v0  ;;  %v1189_v50 = vpack.c.bf16 %v1104_v52, %v1103_v56  ;;  %v3172_v11 = vmul.f32 0.0078125, %v533_v43 }
 0x1b2   : > { %v645_v37 = vpop.xlane.xlu0 %644  ;;  %v918_v38 = vmul.f32 %v3168_v15, %v3168_v15 }
 0x1b3   : > { %2033 = vmatprep.mubr.msk.bf16.mxu0 %vm314_vm0, %v1213_v57  ;;  %2073 = vmatprep.mubr.msk.bf16.mxu1 %vm314_vm0, %v1189_v50  ;;  %v917_v32 = vmul.f32 %v3172_v11, %v3172_v11 }
 0x1b5   : > { %v2211_v8 = vpop.eup %2210  ;;  %v776_v34 = vpop.xlane.xlu1 %775 }
 0x1b6   : > { %v773_v53 = vpop.xlane.xlu0 %772  ;;  %v2213_v2 = vpop.eup %2212  ;;  %v820_v63 = vadd.f32 %v776_v34, %v648_v49  ;;  %v1170_v3 = vmul.f32 %v2211_v8, %v1138_v59  ;;  %v1106_v4 = vmul.f32 %v2211_v8, %v1074_v60  ;;  %v1076_v60 = vsub.f32 %v2258_v29, %v3150_v58 }
 0x1b7   : > { %v819_v27 = vadd.f32 %v773_v53, %v645_v37  ;;  %v1169_v13 = vmul.f32 %v2213_v2, %v1137_v44  ;;  %v1105_v45 = vmul.f32 %v2213_v2, %v1073_v40  ;;  %v1140_v59 = vsub.f32 %v2259_v61, %v3150_v58 }
 0x1b8   : > { %v884_v22 = vmul.f32 0.0078125, %v820_v63  ;;  %v1075_v40 = vsub.f32 %v2260_v12, %v3158_v62  ;;  %v1139_v44 = vsub.f32 %v2261_v28, %v3158_v62  ;;  %v2262_v62 = vld [vmem:[%s2584_s13 + $0x1b0] sm:$0xff] }
 0x1b9   : > { %v883_v23 = vmul.f32 0.0078125, %v819_v27  ;;  %v654_v25 = vpop.xlane.xlu1 %653  ;;  %v1214_v24 = vpack.c.bf16 %v1170_v3, %v1169_v13  ;;  %v1190_v54 = vpack.c.bf16 %v1106_v4, %v1105_v45 }
 0x1ba   : > { %v651_v19 = vpop.xlane.xlu0 %650  ;;  %v948_v55 = vsub.f32 %v884_v22, %v916_v31 }
 0x1bb   : > { %v947_v16 = vsub.f32 %v883_v23, %v915_v46  ;;  %2034 = vmatmul.mubr.msk.bf16.gmra.mxu0 %vm314_vm0, %v1214_v24  ;;  %2074 = vmatmul.mubr.msk.bf16.gmra.mxu1 %vm314_vm0, %v1190_v54  ;;  %v1078_v46 = vsub.f32 %v2262_v62, %v3168_v15  ;;  %v2263_v23 = vld [vmem:[%s2584_s13 + $0x1b8] sm:$0xff]  ;;  %v2264_v54 = vld [vmem:[%s2584_s13 + $0x1a0] sm:$0xff] }
 0x1bc   : > { %v980_v14 = vmax.f32 %v948_v55, 0.0  ;;  %v1077_v55 = vsub.f32 %v2264_v54, %v3172_v11 }
 0x1bd   : > { %v979_v20 = vmax.f32 %v947_v16, 0.0  ;;  %v782_v1 = vpop.xlane.xlu1 %781  ;;  %v2265_v16 = vld [vmem:[%s2584_s13 + $0x1a8] sm:$0xff] }
 0x1be   : > { %v779_v17 = vpop.xlane.xlu0 %778  ;;  %v1012_v10 = vadd.f32 1e-05, %v980_v14  ;;  %v822_v18 = vadd.f32 %v782_v1, %v654_v25  ;;  %v1142_v25 = vsub.f32 %v2263_v23, %v3168_v15  ;;  %v1141_v14 = vsub.f32 %v2265_v16, %v3172_v11 }
 0x1bf   : > { %v1011_v41 = vadd.f32 1e-05, %v979_v20  ;;  %v821_v30 = vadd.f32 %v779_v17, %v651_v19 }
 0x1c0   : > { %2214 = vrsqrt.f32 %v1012_v10  ;;  %v886_v39 = vmul.f32 0.0078125, %v822_v18 }
 0x1c1   : > { %v885_v48 = vmul.f32 0.0078125, %v821_v30  ;;  %2216 = vrsqrt.f32 %v1011_v41  ;;  %v404_v36 = vpop.xlane.xlu1 %403 }
 0x1c2   : > { %v401_v51 = vpop.xlane.xlu0 %400  ;;  %v950_v47 = vsub.f32 %v886_v39, %v918_v38 }
 0x1c3   : > { %v949_v52 = vsub.f32 %v885_v48, %v917_v32 }
 0x1c4   : > { %v982_v33 = vmax.f32 %v950_v47, 0.0 }
 0x1c5   : > { %v981_v0 = vmax.f32 %v949_v52, 0.0  ;;  %v500_v56 = vpop.xlane.xlu1 %499 }
 0x1c6   : > { %v497_v21 = vpop.xlane.xlu0 %496  ;;  %v1014_v49 = vadd.f32 1e-05, %v982_v33  ;;  %v536_v3 = vadd.f32 %v500_v56, %v404_v36 }
 0x1c7   : > { %v1013_v37 = vadd.f32 1e-05, %v981_v0  ;;  %v535_v31 = vadd.f32 %v497_v21, %v401_v51 }
 0x1c8   : > { %2218 = vrsqrt.f32 %v1014_v49  ;;  %v3186_v22 = vmul.f32 0.0078125, %v536_v3 }
 0x1c9   : > { %2220 = vrsqrt.f32 %v1013_v37  ;;  %v410_v57 = vpop.xlane.xlu1 %409  ;;  %v3194_v19 = vmul.f32 0.0078125, %v535_v31 }
 0x1ca   : > { %v407_v50 = vpop.xlane.xlu0 %406  ;;  %v920_v15 = vmul.f32 %v3186_v22, %v3186_v22 }
 0x1cb   : > { %v919_v36 = vmul.f32 %v3194_v19, %v3194_v19 }
 0x1cd   : > { %v2215_v8 = vpop.eup %2214  ;;  %v506_v34 = vpop.xlane.xlu1 %505 }
 0x1ce   : > { %v503_v53 = vpop.xlane.xlu0 %502  ;;  %v2217_v2 = vpop.eup %2216  ;;  %v1172_v63 = vmul.f32 %v2215_v8, %v1140_v59  ;;  %v1108_v27 = vmul.f32 %v2215_v8, %v1076_v60  ;;  %v538_v32 = vadd.f32 %v506_v34, %v410_v57  ;;  %v3209_v57 = vld [vmem:[%s3359_s3] ss:$0 sm:$0xff] }
 0x1cf   : > { %v1171_v4 = vmul.f32 %v2217_v2, %v1139_v44  ;;  %v1107_v35 = vmul.f32 %v2217_v2, %v1075_v40  ;;  %v537_v11 = vadd.f32 %v503_v53, %v407_v50 }
 0x1d0   : > { %v3212_v29 = vmul.f32 0.0078125, %v538_v32 }
 0x1d1   : > { %v660_v58 = vpop.xlane.xlu1 %659  ;;  %v1215_v45 = vpack.c.bf16 %v1172_v63, %v1171_v4  ;;  %v1191_v43 = vpack.c.bf16 %v1108_v27, %v1107_v35  ;;  %v3214_v59 = vmul.f32 0.0078125, %v537_v11 }
 0x1d2   : > { %v657_v13 = vpop.xlane.xlu0 %656  ;;  %v922_v31 = vmul.f32 %v3212_v29, %v3212_v29 }
 0x1d3   : > { %2037 = vmatprep.mubr.msk.bf16.mxu0 %vm314_vm0, %v1215_v45  ;;  %2077 = vmatprep.mubr.msk.bf16.mxu1 %vm314_vm0, %v1191_v43  ;;  %v921_v45 = vmul.f32 %v3214_v59, %v3214_v59 }
 0x1d5   : > { %v2219_v24 = vpop.eup %2218  ;;  %v788_v20 = vpop.xlane.xlu1 %787 }
 0x1d6   : > { %v785_v1 = vpop.xlane.xlu0 %784  ;;  %v2221_v17 = vpop.eup %2220  ;;  %v824_v10 = vadd.f32 %v788_v20, %v660_v58  ;;  %v1174_v18 = vmul.f32 %v2219_v24, %v1142_v25  ;;  %v1110_v30 = vmul.f32 %v2219_v24, %v1078_v46 }
 0x1d7   : > { %v823_v41 = vadd.f32 %v785_v1, %v657_v13  ;;  %v1173_v38 = vmul.f32 %v2221_v17, %v1141_v14  ;;  %v1109_v39 = vmul.f32 %v2221_v17, %v1077_v55  ;;  %v2266_v17 = vld [vmem:[%s2584_s13 + $0x1d0] sm:$0xff] }
 0x1d8   : > { %v888_v48 = vmul.f32 0.0078125, %v824_v10  ;;  %v1080_v10 = vsub.f32 %v2266_v17, %v3186_v22 }
 0x1d9   : > { %v887_v51 = vmul.f32 0.0078125, %v823_v41  ;;  %v666_v47 = vpop.xlane.xlu1 %665  ;;  %v1216_v33 = vpack.c.bf16 %v1174_v18, %v1173_v38  ;;  %v1192_v0 = vpack.c.bf16 %v1110_v30, %v1109_v39  ;;  %v1144_v41 = vsub.f32 %v2967_v6, %v3186_v22  ;;  %v2267_v30 = vld [vmem:[%s2584_s13 + $0x1c0] sm:$0xff] }
 0x1da   : > { %v663_v52 = vpop.xlane.xlu0 %662  ;;  %v952_v56 = vsub.f32 %v888_v48, %v920_v15  ;;  %v1079_v15 = vsub.f32 %v2267_v30, %v3194_v19  ;;  %v1143_v38 = vsub.f32 %v2970_v9, %v3194_v19  ;;  %v1082_v6 = vsub.f32 %v2981_v7, %v3212_v29 }
 0x1db   : > { %v951_v21 = vsub.f32 %v887_v51, %v919_v36  ;;  %v2015_v49 = vpop.f32.mrf.mxu0  ;;  %2038 = vmatmul.mubr.msk.bf16.gmra.mxu0 %vm314_vm0, %v1216_v33  ;;  %v2055_v37 = vpop.f32.mrf.mxu1  ;;  %2078 = vmatmul.mubr.msk.bf16.gmra.mxu1 %vm314_vm0, %v1192_v0  ;;  %v1146_v22 = vsub.f32 %v2993_v26, %v3212_v29  ;;  %v1081_v9 = vsub.f32 %v2984_v42, %v3214_v59 }
 0x1dc   : > { %v984_v50 = vmax.f32 %v952_v56, 0.0  ;;  %v1575_v61 = vadd.f32 %v2055_v37, %v2015_v49  ;;  %v1145_v19 = vsub.f32 %v3000_v5, %v3214_v59 }
 0x1dd   : > { %v983_v60 = vmax.f32 %v951_v21, 0.0  ;;  %v1333_v8 = vpop.f32.mrf.mxu0  ;;  %v1566_v12 = vpop.f32.mrf.mxu1 }
 0x1de   : > { %v1016_v40 = vadd.f32 1e-05, %v984_v50  ;;  %v1702_v44 = vadd.f32 %v3209_v57, %v1575_v61  ;;  %v1567_v34 = vadd.f32 %v1566_v12, %v1333_v8  ;;  %v794_v53 = vpop.xlane.xlu1 %793  ;;  %v791_v2 = vpop.xlane.xlu0 %790 }
 0x1df   : > { %v1015_v28 = vadd.f32 1e-05, %v983_v60  ;;  %v826_v63 = vadd.f32 %v794_v53, %v666_v47  ;;  %v825_v27 = vadd.f32 %v791_v2, %v663_v52  ;;  %v2016_v3 = vpop.f32.mrf.mxu0  ;;  %v2056_v4 = vpop.f32.mrf.mxu1 }
 0x1e0   : > { %2222 = vrsqrt.f32 %v1016_v40  ;;  %1734 = vst [vmem:[%s3217_s5 + $0x10] sm:$0xff] %v1702_v44  ;;  %v1700_v35 = vadd.f32 %v3209_v57, %v1567_v34  ;;  %v1578_v58 = vadd.f32 %v2056_v4, %v2016_v3 }
 0x1e1   : > { %2224 = vrsqrt.f32 %v1015_v28  ;;  %v890_v13 = vmul.f32 0.0078125, %v826_v63  ;;  %v889_v43 = vmul.f32 0.0078125, %v825_v27  ;;  %v1336_v62 = vpop.f32.mrf.mxu0  ;;  %v1569_v46 = vpop.f32.mrf.mxu1 }
 0x1e2   : > { %1732 = vst [vmem:[%s3217_s5] sm:$0xff] %v1700_v35  ;;  %v1703_v23 = vadd.f32 %v3209_v57, %v1578_v58  ;;  %v1570_v25 = vadd.f32 %v1569_v46, %v1336_v62 }
 0x1e3   : > { %v954_v24 = vsub.f32 %v890_v13, %v922_v31  ;;  %v953_v54 = vsub.f32 %v889_v43, %v921_v45 }
 0x1e4   : > { %1735 = vst [vmem:[%s3217_s5 + $0x18] sm:$0xff] %v1703_v23  ;;  %v1701_v55 = vadd.f32 %v3209_v57, %v1570_v25 }
 0x1e5   : > { %v986_v16 = vmax.f32 %v954_v24, 0.0  ;;  %v985_v14 = vmax.f32 %v953_v54, 0.0 }
 0x1e6   : > { %1733 = vst [vmem:[%s3217_s5 + $0x8] sm:$0xff] %v1701_v55 }
 0x1e7   : > { %v1018_v20 = vadd.f32 1e-05, %v986_v16  ;;  %v1017_v1 = vadd.f32 1e-05, %v985_v14 }
 0x1e9   : > { %2226 = vrsqrt.f32 %v1018_v20 }
 0x1ea   : > { %2228 = vrsqrt.f32 %v1017_v1 }
 0x1ed   : > { %v2223_v18 = vpop.eup %2222 }
 0x1ee   : > { %v2225_v39 = vpop.eup %2224  ;;  %v1176_v32 = vmul.f32 %v2223_v18, %v1144_v41  ;;  %v1112_v48 = vmul.f32 %v2223_v18, %v1080_v10 }
 0x1ef   : > { %v1175_v36 = vmul.f32 %v2225_v39, %v1143_v38  ;;  %v1111_v51 = vmul.f32 %v2225_v39, %v1079_v15 }
 0x1f1   : > { %v1217_v11 = vpack.c.bf16 %v1176_v32, %v1175_v36  ;;  %v1193_v47 = vpack.c.bf16 %v1112_v48, %v1111_v51 }
 0x1f3   : > { %2041 = vmatprep.mubr.msk.bf16.mxu0 %vm314_vm0, %v1217_v11  ;;  %2081 = vmatprep.mubr.msk.bf16.mxu1 %vm314_vm0, %v1193_v47 }
 0x1f6   : > { %v2227_v52 = vpop.eup %2226 }
 0x1f7   : > { %v2229_v33 = vpop.eup %2228  ;;  %v1178_v0 = vmul.f32 %v2227_v52, %v1146_v22  ;;  %v1114_v56 = vmul.f32 %v2227_v52, %v1082_v6 }
 0x1f8   : > { %v1177_v21 = vmul.f32 %v2229_v33, %v1145_v19  ;;  %v1113_v49 = vmul.f32 %v2229_v33, %v1081_v9 }
 0x1fa   : > { %v1218_v37 = vpack.c.bf16 %v1178_v0, %v1177_v21  ;;  %v1194_v50 = vpack.c.bf16 %v1114_v56, %v1113_v49 }
 0x1fb   : > { %v2019_v60 = vpop.f32.mrf.mxu0  ;;  %v2059_v7 = vpop.f32.mrf.mxu1 }
 0x1fc   : > { %2042 = vmatmul.mubr.msk.bf16.gmra.mxu0 %vm314_vm0, %v1218_v37  ;;  %v1591_v26 = vadd.f32 %v2059_v7, %v2019_v60  ;;  %2082 = vmatmul.mubr.msk.bf16.gmra.mxu1 %vm314_vm0, %v1194_v50 }
 0x1fd   : > { %v1349_v42 = vpop.f32.mrf.mxu0  ;;  %v1582_v5 = vpop.f32.mrf.mxu1 }
 0x1fe   : > { %v1706_v29 = vadd.f32 %v3209_v57, %v1591_v26  ;;  %v1583_v61 = vadd.f32 %v1582_v5, %v1349_v42 }
 0x1ff   : > { %v2020_v59 = vpop.f32.mrf.mxu0  ;;  %v2060_v8 = vpop.f32.mrf.mxu1 }
 0x200   : > { %1738 = vst [vmem:[%s3217_s5 + $0x30] sm:$0xff] %v1706_v29  ;;  %v1704_v12 = vadd.f32 %v3209_v57, %v1583_v61  ;;  %v1594_v40 = vadd.f32 %v2060_v8, %v2020_v59 }
 0x201   : > { %v1352_v28 = vpop.f32.mrf.mxu0  ;;  %v1585_v44 = vpop.f32.mrf.mxu1 }
 0x202   : > { %1736 = vst [vmem:[%s3217_s5 + $0x20] sm:$0xff] %v1704_v12  ;;  %v1707_v34 = vadd.f32 %v3209_v57, %v1594_v40  ;;  %v1586_v53 = vadd.f32 %v1585_v44, %v1352_v28 }
 0x204   : > { %1739 = vst [vmem:[%s3217_s5 + $0x38] sm:$0xff] %v1707_v34  ;;  %v1705_v2 = vadd.f32 %v3209_v57, %v1586_v53 }
 0x206   : > { %1737 = vst [vmem:[%s3217_s5 + $0x28] sm:$0xff] %v1705_v2 }
 0x21b   : > { %v2023_v63 = vpop.f32.mrf.mxu0  ;;  %v2063_v27 = vpop.f32.mrf.mxu1 }
 0x21c   : > { %v1607_v3 = vadd.f32 %v2063_v27, %v2023_v63 }
 0x21d   : > { %v1365_v4 = vpop.f32.mrf.mxu0  ;;  %v1598_v35 = vpop.f32.mrf.mxu1 }
 0x21e   : > { %v1710_v31 = vadd.f32 %v3209_v57, %v1607_v3  ;;  %v1599_v58 = vadd.f32 %v1598_v35, %v1365_v4 }
 0x21f   : > { %v2024_v13 = vpop.f32.mrf.mxu0  ;;  %v2064_v45 = vpop.f32.mrf.mxu1 }
 0x220   : > { %1742 = vst [vmem:[%s3217_s5 + $0x50] sm:$0xff] %v1710_v31  ;;  %v1708_v43 = vadd.f32 %v3209_v57, %v1599_v58  ;;  %v1610_v62 = vadd.f32 %v2064_v45, %v2024_v13 }
 0x221   : > { %v1368_v46 = vpop.f32.mrf.mxu0  ;;  %v1601_v23 = vpop.f32.mrf.mxu1 }
 0x222   : > { %1740 = vst [vmem:[%s3217_s5 + $0x40] sm:$0xff] %v1708_v43  ;;  %v1711_v25 = vadd.f32 %v3209_v57, %v1610_v62  ;;  %v1602_v24 = vadd.f32 %v1601_v23, %v1368_v46 }
 0x224   : > { %1743 = vst [vmem:[%s3217_s5 + $0x58] sm:$0xff] %v1711_v25  ;;  %v1709_v54 = vadd.f32 %v3209_v57, %v1602_v24 }
 0x226   : > { %1741 = vst [vmem:[%s3217_s5 + $0x48] sm:$0xff] %v1709_v54 }
 0x23b   : > { %v2027_v55 = vpop.f32.mrf.mxu0  ;;  %v2067_v16 = vpop.f32.mrf.mxu1 }
 0x23c   : > { %v1623_v14 = vadd.f32 %v2067_v16, %v2027_v55 }
 0x23d   : > { %v1381_v20 = vpop.f32.mrf.mxu0  ;;  %v1614_v1 = vpop.f32.mrf.mxu1 }
 0x23e   : > { %v1714_v17 = vadd.f32 %v3209_v57, %v1623_v14  ;;  %v1615_v10 = vadd.f32 %v1614_v1, %v1381_v20 }
 0x23f   : > { %v2028_v41 = vpop.f32.mrf.mxu0  ;;  %v2068_v18 = vpop.f32.mrf.mxu1 }
 0x240   : > { %1746 = vst [vmem:[%s3217_s5 + $0x70] sm:$0xff] %v1714_v17  ;;  %v1712_v30 = vadd.f32 %v3209_v57, %v1615_v10  ;;  %v1626_v15 = vadd.f32 %v2068_v18, %v2028_v41 }
 0x241   : > { %v1384_v38 = vpop.f32.mrf.mxu0  ;;  %v1617_v39 = vpop.f32.mrf.mxu1 }
 0x242   : > { %1744 = vst [vmem:[%s3217_s5 + $0x60] sm:$0xff] %v1712_v30  ;;  %v1715_v32 = vadd.f32 %v3209_v57, %v1626_v15  ;;  %v1618_v48 = vadd.f32 %v1617_v39, %v1384_v38 }
 0x244   : > { %1747 = vst [vmem:[%s3217_s5 + $0x78] sm:$0xff] %v1715_v32  ;;  %v1713_v36 = vadd.f32 %v3209_v57, %v1618_v48 }
 0x246   : > { %1745 = vst [vmem:[%s3217_s5 + $0x68] sm:$0xff] %v1713_v36 }
 0x25b   : > { %v2031_v51 = vpop.f32.mrf.mxu0  ;;  %v2071_v11 = vpop.f32.mrf.mxu1 }
 0x25c   : > { %v1639_v47 = vadd.f32 %v2071_v11, %v2031_v51 }
 0x25d   : > { %v1397_v6 = vpop.f32.mrf.mxu0  ;;  %v1630_v22 = vpop.f32.mrf.mxu1 }
 0x25e   : > { %v1718_v52 = vadd.f32 %v3209_v57, %v1639_v47  ;;  %v1631_v9 = vadd.f32 %v1630_v22, %v1397_v6 }
 0x25f   : > { %v2032_v19 = vpop.f32.mrf.mxu0  ;;  %v2072_v33 = vpop.f32.mrf.mxu1 }
 0x260   : > { %1750 = vst [vmem:[%s3217_s5 + $0x90] sm:$0xff] %v1718_v52  ;;  %v1716_v0 = vadd.f32 %v3209_v57, %v1631_v9  ;;  %v1642_v56 = vadd.f32 %v2072_v33, %v2032_v19 }
 0x261   : > { %v1400_v21 = vpop.f32.mrf.mxu0  ;;  %v1633_v49 = vpop.f32.mrf.mxu1 }
 0x262   : > { %1748 = vst [vmem:[%s3217_s5 + $0x80] sm:$0xff] %v1716_v0  ;;  %v1719_v37 = vadd.f32 %v3209_v57, %v1642_v56  ;;  %v1634_v50 = vadd.f32 %v1633_v49, %v1400_v21 }
 0x264   : > { %1751 = vst [vmem:[%s3217_s5 + $0x98] sm:$0xff] %v1719_v37  ;;  %v1717_v60 = vadd.f32 %v3209_v57, %v1634_v50 }
 0x266   : > { %1749 = vst [vmem:[%s3217_s5 + $0x88] sm:$0xff] %v1717_v60 }
 0x27b   : > { %v2035_v7 = vpop.f32.mrf.mxu0  ;;  %v2075_v26 = vpop.f32.mrf.mxu1 }
 0x27c   : > { %v1655_v42 = vadd.f32 %v2075_v26, %v2035_v7 }
 0x27d   : > { %v1413_v5 = vpop.f32.mrf.mxu0  ;;  %v1646_v29 = vpop.f32.mrf.mxu1 }
 0x27e   : > { %v1722_v61 = vadd.f32 %v3209_v57, %v1655_v42  ;;  %v1647_v59 = vadd.f32 %v1646_v29, %v1413_v5 }
 0x27f   : > { %v2036_v8 = vpop.f32.mrf.mxu0  ;;  %v2076_v12 = vpop.f32.mrf.mxu1 }
 0x280   : > { %1754 = vst [vmem:[%s3217_s5 + $0xb0] sm:$0xff] %v1722_v61  ;;  %v1720_v40 = vadd.f32 %v3209_v57, %v1647_v59  ;;  %v1658_v28 = vadd.f32 %v2076_v12, %v2036_v8 }
 0x281   : > { %v1416_v44 = vpop.f32.mrf.mxu0  ;;  %v1649_v34 = vpop.f32.mrf.mxu1 }
 0x282   : > { %1752 = vst [vmem:[%s3217_s5 + $0xa0] sm:$0xff] %v1720_v40  ;;  %v1723_v53 = vadd.f32 %v3209_v57, %v1658_v28  ;;  %v1650_v2 = vadd.f32 %v1649_v34, %v1416_v44 }
 0x284   : > { %1755 = vst [vmem:[%s3217_s5 + $0xb8] sm:$0xff] %v1723_v53  ;;  %v1721_v63 = vadd.f32 %v3209_v57, %v1650_v2 }
 0x286   : > { %1753 = vst [vmem:[%s3217_s5 + $0xa8] sm:$0xff] %v1721_v63 }
 0x29b   : > { %v2039_v27 = vpop.f32.mrf.mxu0  ;;  %v2079_v3 = vpop.f32.mrf.mxu1 }
 0x29c   : > { %v1671_v4 = vadd.f32 %v2079_v3, %v2039_v27 }
 0x29d   : > { %v1429_v35 = vpop.f32.mrf.mxu0  ;;  %v1662_v31 = vpop.f32.mrf.mxu1 }
 0x29e   : > { %v1726_v58 = vadd.f32 %v3209_v57, %v1671_v4  ;;  %v1663_v13 = vadd.f32 %v1662_v31, %v1429_v35 }
 0x29f   : > { %v2040_v45 = vpop.f32.mrf.mxu0  ;;  %v2080_v43 = vpop.f32.mrf.mxu1 }
 0x2a0   : > { %1758 = vst [vmem:[%s3217_s5 + $0xd0] sm:$0xff] %v1726_v58  ;;  %v1724_v62 = vadd.f32 %v3209_v57, %v1663_v13  ;;  %v1674_v46 = vadd.f32 %v2080_v43, %v2040_v45 }
 0x2a1   : > { %v1432_v23 = vpop.f32.mrf.mxu0  ;;  %v1665_v25 = vpop.f32.mrf.mxu1 }
 0x2a2   : > { %1756 = vst [vmem:[%s3217_s5 + $0xc0] sm:$0xff] %v1724_v62  ;;  %v1727_v24 = vadd.f32 %v3209_v57, %v1674_v46  ;;  %v1666_v54 = vadd.f32 %v1665_v25, %v1432_v23 }
 0x2a4   : > { %1759 = vst [vmem:[%s3217_s5 + $0xd8] sm:$0xff] %v1727_v24  ;;  %v1725_v55 = vadd.f32 %v3209_v57, %v1666_v54 }
 0x2a6   : > { %1757 = vst [vmem:[%s3217_s5 + $0xc8] sm:$0xff] %v1725_v55 }
 0x2bc   : > { %v2043_v16 = vpop.f32.mrf.mxu0  ;;  %v2083_v14 = vpop.f32.mrf.mxu1 }
 0x2bd   : > { %v1687_v20 = vadd.f32 %v2083_v14, %v2043_v16 }
 0x2be   : > { %v1445_v1 = vpop.f32.mrf.mxu0  ;;  %v1678_v17 = vpop.f32.mrf.mxu1 }
 0x2bf   : > { %v1730_v10 = vadd.f32 %v3209_v57, %v1687_v20  ;;  %v1679_v41 = vadd.f32 %v1678_v17, %v1445_v1 }
 0x2c0   : > { %v2044_v18 = vpop.f32.mrf.mxu0  ;;  %v2084_v30 = vpop.f32.mrf.mxu1 }
 0x2c1   : > { %1762 = vst [vmem:[%s3217_s5 + $0xf0] sm:$0xff] %v1730_v10  ;;  %v1728_v15 = vadd.f32 %v3209_v57, %v1679_v41  ;;  %v1690_v38 = vadd.f32 %v2084_v30, %v2044_v18 }
 0x2c2   : > { %v1448_v39 = vpop.f32.mrf.mxu0  ;;  %v1681_v32 = vpop.f32.mrf.mxu1 }
 0x2c3   : > { %1760 = vst [vmem:[%s3217_s5 + $0xe0] sm:$0xff] %v1728_v15  ;;  %v1731_v48 = vadd.f32 %v3209_v57, %v1690_v38  ;;  %v1682_v36 = vadd.f32 %v1681_v32, %v1448_v39 }
 0x2c5   : > { %1763 = vst [vmem:[%s3217_s5 + $0xf8] sm:$0xff] %v1731_v48  ;;  %v1729_v51 = vadd.f32 %v3209_v57, %v1682_v36 }
 0x2c7   : > { %1761 = vst [vmem:[%s3217_s5 + $0xe8] sm:$0xff] %v1729_v51 }
 0x2c8   : > { %2361 = shalt.err (!%p2358_p9)
}
 0x2c9   : > { %s2362_s10 = scalar_lea.hbm %s3308_s26, 4096  ;;  %s2366_s21 = scalar_lea.hbm %s3360_s4, 8192 }
 0x2ca   : > { %p2363_p13 = scmp.ne.s32.totalorder %s3308_s26, %s2362_s10  ;;  %p2367_p4 = scmp.lt.s32.totalorder %s3308_s26, %s3360_s4 }
 0x2cb   : > { %p2368_p8 = scmp.lt.s32.totalorder %s2366_s21, %s2362_s10 }
 0x2cc   : > { %p2364_p5 = pnand %p2363_p13, %p3376_p10 }
 0x2cd   : > { %p2369_p3 = por %p2368_p8, %p2367_p4 }
 0x2ce   : > { %p2365_p0 = pneg %p2364_p5 }
 0x2d0   : > { %p2370_p11 = pnand %p2369_p3, %p2365_p0 }
 0x2d2   : > { %2373 = shalt.err (!%p2370_p11)
}
 0x2d3   : > { %s2426_s5 = smov 128   ;;  %s2427_s6 = smov 8  }
 0x2d4   : > { %2095 = dma.vmem_to_hbm [thread:$0]  (%p3376_p10), %s3310_s7, 4096, %s3308_s26, %s1765_s19, %s2426_s5, %s2426_s5, %s2427_s6  }
 0x2d5 PF: > { %s1793_s25 = sand.u32 1, %s2404_s15   ;;  %p3377_p1 = scmp.ne.s32.totalorder %s3366_s22, 0 }
 0x2d6   : > { %p3378_p2 = scmp.ge.s32.totalorder %s2416_s18, 2  ;;  %s1794_s24 = scalar_lea.sflag [#allocation4], %s1793_s25 }
 0x2d8   : > { %p2109_p6 = pnand %p3378_p2, %p3377_p1 }
 0x2da   : > { %p2110_p12 = pneg %p2109_p6 }
 0x2dc   : > { %2399 = dma.done.wait (%p2110_p12), %s1794_s24, 4096  }
 0x2dd   : > { %2401 = vsyncadd (%p2110_p12), %s1794_s24, 4294963200  ;;  %p18_p7 = scmp.ge.s32.totalorder %s2525_s11, 4   ;;  %s3379_s15 = smov %s2408_s16 }
 0x2de   : > { %s3380_s16 = smov %s2412_s17  ;;  %s3381_s17 = smov %s2541_s20 }
 0x2df   : > { %s3382_s18 = smov %s2525_s11  ;;  %20 = sbr.rel (!%p18_p7) target bundleno = 6 (0x6), region = 90 }
 0x2e4   :  { %1799 = vsyncpa [#allocation3], 1 }
 0x2e5   :  { %1801 = vsyncpa [#allocation3 + $0x1], 1 }
 0x2e6   :  { %1802 = vsyncpa [#allocation6], 1 }
 0x2e7   :  { %1803 = vsyncpa [#allocation4], 1 }
 0x2e8   :  { %1805 = vsyncpa [#allocation4 + $0x1], 1 }

</bundles_post_ra>
